<compile_context>
chip_gen: v5e
topology: v5e:2x2
jax: 0.10.0
libtpu: 0.0.40
codegen_flags: <defaults>
</compile_context>

<pallas_src>
import jax
import jax.numpy as jnp
from jax import lax
from jax.experimental import pallas as pl
from jax.experimental.pallas import tpu as pltpu


# ----------------------------------------------------------------------------
# The single fused Pallas kernel
# ----------------------------------------------------------------------------
def _lenet_fused_kernel(xw_ref, k1_ref, b1_ref, s1_ref, k2_ref, b2_ref, s2_ref,
                        fc1w_ref, fc1b_ref, fc2w_ref, fc2b_ref,
                        fc3w_ref, fc3b_ref, out_ref):
    """One batch tile (tb images) of the full LeNet forward pass, all in VMEM.

    Activation layouts (tb = batch tile):
      xw   : (24, tb, 140)  rows=oh, sublanes=b, lanes=(kh, w)   [pre-windowed]
      z1   : (24*tb, 144)   rows=(oh, b), lanes=(c, ow)    c=6,  ow=24
      h1   : (12, tb, 72)   rows=h',      lanes=(c, w')    c=6,  w'=12
      z2   : (8*tb, 128)    rows=(oh, b), lanes=(co, ow)   co=16, ow=8
      h2   : (4, tb, 64)    rows=h',      lanes=(co, w')   co=16, w'=4
      fc   : (tb, 120/84/128)
    """
    tb = xw_ref.shape[1]

    def mm(a, b):
        return jnp.dot(a, b, preferred_element_type=jnp.float32)

    # ---- conv1 (1->6, 5x5): single deep-K matmul (K = 5*28 = 140) ----------
    xw = xw_ref[...].reshape(24 * tb, 5 * 28)
    z1 = jnp.maximum(mm(xw, k1_ref[...]) + b1_ref[...], 0.0)        # (24*tb, 144)

    # ---- 2x2 max pool #1: lanes via tiny selectors, rows via reshape+max ---
    t1 = jnp.maximum(mm(z1, s1_ref[0]), mm(z1, s1_ref[1]))          # (24*tb, 72)
    t1 = t1.reshape(12, 2, tb, 72)
    h1 = jnp.maximum(t1[:, 0], t1[:, 1])                            # (12, tb, 72)

    # ---- conv2 (6->16, 5x5): 5 accumulating banded matmuls (K = 72) --------
    z2 = mm(h1[0:8].reshape(8 * tb, 72), k2_ref[0])
    for kh in range(1, 5):
        z2 = z2 + mm(h1[kh:kh + 8].reshape(8 * tb, 72), k2_ref[kh])
    z2 = jnp.maximum(z2 + b2_ref[...], 0.0)                         # (8*tb, 128)

    # ---- 2x2 max pool #2 ----------------------------------------------------
    t2 = jnp.maximum(mm(z2, s2_ref[0]), mm(z2, s2_ref[1]))          # (8*tb, 64)
    t2 = t2.reshape(4, 2, tb, 64)
    h2 = jnp.maximum(t2[:, 0], t2[:, 1])                            # (4, tb, 64)

    # ---- fc1: flatten folded into 4 permuted weight chunks + ReLU ----------
    a3 = mm(h2[0], fc1w_ref[0])
    for j in range(1, 4):
        a3 = a3 + mm(h2[j], fc1w_ref[j])
    h3 = jnp.maximum(a3 + fc1b_ref[...], 0.0)                       # (tb, 120)

    # ---- fc2 + ReLU, fc3 (lane-padded to 128 output columns) ---------------
    h4 = jnp.maximum(mm(h3, fc2w_ref[...]) + fc2b_ref[...], 0.0)    # (tb, 84)
    out_ref[...] = mm(h4, fc3w_ref[...]) + fc3b_ref[...]            # (tb, 128)


# ----------------------------------------------------------------------------
# Wrapper-side constant builders (plain JAX, tiny; all become resident inputs)
# ----------------------------------------------------------------------------
def _conv_banded_weights(w_hwio, in_w, out_w):
    """(5,5,Cin,Cout) conv weights -> (5, Cin*in_w, Cout*out_w) banded matrices.

    K[kh, ci*in_w + ow + kw, co*out_w + ow] = w[kh, kw, ci, co]
    so that rows(oh,b) x lanes(ci,w) @ K[kh] accumulates the kh-th conv row.
    """
    w = w_hwio.astype(jnp.float32)
    k, _, cin, cout = w.shape
    kw = jnp.arange(k)[:, None, None]
    wp = jnp.arange(in_w)[None, :, None]
    ow = jnp.arange(out_w)[None, None, :]
    onehot = (wp == ow + kw).astype(jnp.float32)             # (k, in_w, out_w)
    kmat = jnp.einsum("kwo,hkic->hiwco", onehot, w)          # (kh,ci,in_w,co,ow)
    return kmat.reshape(k, cin * in_w, cout * out_w)


def _lane_pool_matrices(channels, width):
    """(2, C*W, C*(W//2)) lane-dim 2x max-pool selectors (per-channel blocks)."""
    half = width // 2
    i = jnp.arange(channels * width)[:, None]
    j = jnp.arange(channels * half)[None, :]
    src0 = (j // half) * width + 2 * (j % half)
    return jnp.stack([(i == src0).astype(jnp.float32),
                      (i == src0 + 1).astype(jnp.float32)])


def _resident_spec(shape):
    zeros = (0,) * len(shape)
    return pl.BlockSpec(shape, lambda i, _z=zeros: _z)


# ----------------------------------------------------------------------------
# Forward pass (PyTorch-equivalent semantics), single pallas_call
# ----------------------------------------------------------------------------
def classifier_mnist_forward(x_nchw, params, tile_b=128):
    f32 = jnp.float32
    B = x_nchw.shape[0]

    # tile size: multiple of 8, no larger than the padded batch
    tile_b = max(8, min(int(tile_b), ((B + 7) // 8) * 8))
    tile_b = max(8, (tile_b // 8) * 8)
    bp = ((B + tile_b - 1) // tile_b) * tile_b

    x = x_nchw.astype(f32).reshape(B, 28, 28)                 # C=1
    if bp != B:
        x = jnp.pad(x, ((0, bp - B), (0, 0), (0, 0)))
    x_hbw = jnp.transpose(x, (1, 0, 2))                       # (28, bp, 28)
    # Pre-window conv1's 5 kh-shifted rows side-by-side (deep-K input, lanes=(kh,w)).
    xw = jnp.concatenate([x_hbw[kh:kh + 24] for kh in range(5)], axis=-1)  # (24,bp,140)

    # Conv weights folded into banded correlation matrices (lane-dense outputs).
    k1 = _conv_banded_weights(params["w1"], 28, 24).reshape(140, 144)  # deep-K
    k2 = _conv_banded_weights(params["w2"], 12, 8)            # (5, 72, 128)
    b1e = jnp.repeat(params["b1"].astype(f32), 24).reshape(1, 144)
    b2e = jnp.repeat(params["b2"].astype(f32), 8).reshape(1, 128)

    # Tiny, tile_b-independent lane-pool selectors.
    s1 = _lane_pool_matrices(6, 24)                           # (2, 144, 72)
    s2 = _lane_pool_matrices(16, 8)                           # (2, 128, 64)

    # fc1 rows permuted once: kernel flatten order (h', c, w') -> PyTorch (c, h', w').
    f = jnp.arange(256)
    perm = ((f % 64) // 4) * 16 + (f // 64) * 4 + (f % 4)
    fc1w = params["fc1_w"].astype(f32)[perm].reshape(4, 64, 120)
    fc1b = params["fc1_b"].astype(f32).reshape(1, 120)
    fc2w = params["fc2_w"].astype(f32)
    fc2b = params["fc2_b"].astype(f32).reshape(1, 84)
    # Lane-dense output: pad fc3 to 128 output columns (slice [:, :10] below).
    fc3w = jnp.zeros((84, 128), f32).at[:, :10].set(params["fc3_w"].astype(f32))
    fc3b = jnp.zeros((1, 128), f32).at[:, :10].set(params["fc3_b"].astype(f32))

    operands = (xw, k1, b1e, s1, k2, b2e, s2,
                fc1w, fc1b, fc2w, fc2b, fc3w, fc3b)
    in_specs = [pl.BlockSpec((24, tile_b, 140), lambda i: (0, i, 0))]
    in_specs += [_resident_spec(op.shape) for op in operands[1:]]

    out = pl.pallas_call(
        _lenet_fused_kernel,
        grid=(bp // tile_b,),
        out_shape=jax.ShapeDtypeStruct((bp, 128), jnp.float32),
        in_specs=in_specs,
        out_specs=pl.BlockSpec((tile_b, 128), lambda i: (i, 0)),
        compiler_params=pltpu.CompilerParams(
            dimension_semantics=("parallel",),
            vmem_limit_bytes=64 * 1024 * 1024,
        ),
    )(*operands)
    return out[:B, :10]


# ----------------------------------------------------------------------------
# Pure-JAX reference (verification only)
# ----------------------------------------------------------------------------
def reference_forward(x_nchw, params):
    x = jnp.transpose(x_nchw, (0, 2, 3, 1)).astype(jnp.float32)
    dn = ("NHWC", "HWIO", "NHWC")

    def conv(x, w, b):
        y = lax.conv_general_dilated(x, w, (1, 1), "VALID", dimension_numbers=dn)
        return jax.nn.relu(y + b)

    def pool(x):
        return lax.reduce_window(x, -jnp.inf, lax.max,
                                 (1, 2, 2, 1), (1, 2, 2, 1), "VALID")

    h = pool(conv(x, params["w1"], params["b1"]))
    h = pool(conv(h, params["w2"], params["b2"]))
    B = h.shape[0]
    flat = jnp.transpose(h, (0, 3, 1, 2)).reshape(B, 256)     # PyTorch NCHW flatten
    h = jax.nn.relu(flat @ params["fc1_w"] + params["fc1_b"])
    h = jax.nn.relu(h @ params["fc2_w"] + params["fc2_b"])
    return h @ params["fc3_w"] + params["fc3_b"]


# ----------------------------------------------------------------------------
# Deterministic parameter init (synthetic; shapes from the torch __init__)
# ----------------------------------------------------------------------------
def init_params(key):
    ks = jax.random.split(key, 10)

    def u(k, shape, fan_in):
        bound = 1.0 / jnp.sqrt(fan_in)
        return jax.random.uniform(k, shape, jnp.float32, -bound, bound)

    return {
        "w1": u(ks[0], (5, 5, 1, 6), 25),          # conv1 weight (HWIO)
        "b1": u(ks[1], (6,), 25),
        "w2": u(ks[2], (5, 5, 6, 16), 150),        # conv2 weight (HWIO)
        "b2": u(ks[3], (16,), 150),
        "fc1_w": u(ks[4], (256, 120), 256),
        "fc1_b": u(ks[5], (120,), 256),
        "fc2_w": u(ks[6], (120, 84), 120),
        "fc2_b": u(ks[7], (84,), 120),
        "fc3_w": u(ks[8], (84, 10), 84),
        "fc3_b": u(ks[9], (10,), 84),
    }


if __name__ == "__main__":
    key = jax.random.PRNGKey(0)
    k_param, k_x, k_x2 = jax.random.split(key, 3)
    params = init_params(k_param)

    fwd = jax.jit(classifier_mnist_forward, static_argnames=("tile_b",))

    # --- small test: PyTorch-style NCHW input, batch=2 ----------------------
    x = jax.random.normal(k_x, (2, 1, 28, 28), dtype=jnp.float32)
    out = jax.block_until_ready(fwd(x, params))
    ref = reference_forward(x, params)
    assert out.shape == (2, 10), out.shape
    assert bool(jnp.all(jnp.isfinite(out)))
    assert bool(jnp.allclose(out, ref, atol=1e-3, rtol=1e-3)), \
        float(jnp.max(jnp.abs(out - ref)))

    # --- grid > 1 path (2 batch tiles across the grid) ----------------------
    x2 = jax.random.normal(k_x2, (32, 1, 28, 28), dtype=jnp.float32)
    out2 = jax.block_until_ready(fwd(x2, params, tile_b=16))
    ref2 = reference_forward(x2, params)
    assert out2.shape == (32, 10), out2.shape
    assert bool(jnp.allclose(out2, ref2, atol=1e-3, rtol=1e-3)), \
        float(jnp.max(jnp.abs(out2 - ref2)))

    print("KERNEL_OK")
</pallas_src>

<mosaic_0001>
module attributes {stable_mosaic.version = 11 : i64} {
  func.func @_lenet_fused_kernel(%arg0: i32, %arg1: memref<24x8x140xf32, #tpu.memory_space<vmem>>, %arg2: memref<140x144xf32, #tpu.memory_space<vmem>>, %arg3: memref<1x144xf32, #tpu.memory_space<vmem>>, %arg4: memref<2x144x72xf32, #tpu.memory_space<vmem>>, %arg5: memref<5x72x128xf32, #tpu.memory_space<vmem>>, %arg6: memref<1x128xf32, #tpu.memory_space<vmem>>, %arg7: memref<2x128x64xf32, #tpu.memory_space<vmem>>, %arg8: memref<4x64x120xf32, #tpu.memory_space<vmem>>, %arg9: memref<1x120xf32, #tpu.memory_space<vmem>>, %arg10: memref<120x84xf32, #tpu.memory_space<vmem>>, %arg11: memref<1x84xf32, #tpu.memory_space<vmem>>, %arg12: memref<84x128xf32, #tpu.memory_space<vmem>>, %arg13: memref<1x128xf32, #tpu.memory_space<vmem>>, %arg14: memref<8x128xf32, #tpu.memory_space<vmem>>) attributes {dimension_semantics = [#tpu.dimension_semantics<parallel>], iteration_bounds = array<i64: 1>, scalar_prefetch = 0 : i64, scratch_operands = 0 : i64, tpu.core_type = #tpu.core_type<tc>, window_params = [{transform_indices = @transform_0, window_bounds = array<i64: 24, 8, 140>}, {pipeline_mode = #tpu.pipeline_mode<synchronous>, transform_indices = @transform_1, window_bounds = array<i64: 140, 144>}, {pipeline_mode = #tpu.pipeline_mode<synchronous>, transform_indices = @transform_2, window_bounds = array<i64: 1, 144>}, {pipeline_mode = #tpu.pipeline_mode<synchronous>, transform_indices = @transform_3, window_bounds = array<i64: 2, 144, 72>}, {pipeline_mode = #tpu.pipeline_mode<synchronous>, transform_indices = @transform_4, window_bounds = array<i64: 5, 72, 128>}, {pipeline_mode = #tpu.pipeline_mode<synchronous>, transform_indices = @transform_5, window_bounds = array<i64: 1, 128>}, {pipeline_mode = #tpu.pipeline_mode<synchronous>, transform_indices = @transform_6, window_bounds = array<i64: 2, 128, 64>}, {pipeline_mode = #tpu.pipeline_mode<synchronous>, transform_indices = @transform_7, window_bounds = array<i64: 4, 64, 120>}, {pipeline_mode = #tpu.pipeline_mode<synchronous>, transform_indices = @transform_8, window_bounds = array<i64: 1, 120>}, {pipeline_mode = #tpu.pipeline_mode<synchronous>, transform_indices = @transform_9, window_bounds = array<i64: 120, 84>}, {pipeline_mode = #tpu.pipeline_mode<synchronous>, transform_indices = @transform_10, window_bounds = array<i64: 1, 84>}, {pipeline_mode = #tpu.pipeline_mode<synchronous>, transform_indices = @transform_11, window_bounds = array<i64: 84, 128>}, {pipeline_mode = #tpu.pipeline_mode<synchronous>, transform_indices = @transform_12, window_bounds = array<i64: 1, 128>}, {transform_indices = @transform_13, window_bounds = array<i64: 8, 128>}]} {
    %c0 = arith.constant 0 : index
    %c0_0 = arith.constant 0 : index
    %c0_1 = arith.constant 0 : index
    %0 = vector.load %arg1[%c0, %c0_0, %c0_1] : memref<24x8x140xf32, #tpu.memory_space<vmem>>, vector<24x8x140xf32>
    %1 = vector.shape_cast %0 : vector<24x8x140xf32> to vector<192x140xf32>
    %c0_2 = arith.constant 0 : index
    %c0_3 = arith.constant 0 : index
    %2 = vector.load %arg2[%c0_2, %c0_3] : memref<140x144xf32, #tpu.memory_space<vmem>>, vector<140x144xf32>
    %cst = arith.constant dense<0.000000e+00> : vector<192x144xf32>
    %3 = tpu.matmul %1, %2, %cst {dimension_numbers = #tpu.dot_dimension_numbers<[1], [0], [0], [1], [0, 0, 1, 1], [], []>} : vector<192x140xf32>, vector<140x144xf32>, vector<192x144xf32> -> vector<192x144xf32>
    %c0_4 = arith.constant 0 : index
    %c0_5 = arith.constant 0 : index
    %4 = vector.load %arg3[%c0_4, %c0_5] : memref<1x144xf32, #tpu.memory_space<vmem>>, vector<1x144xf32>
    %5 = vector.broadcast %4 : vector<1x144xf32> to vector<192x144xf32>
    %6 = arith.addf %3, %5 : vector<192x144xf32>
    %cst_6 = arith.constant 0.000000e+00 : f32
    %7 = vector.broadcast %cst_6 : f32 to vector<192x144xf32>
    %8 = arith.maximumf %6, %7 : vector<192x144xf32>
    %c0_7 = arith.constant 0 : index
    %c0_8 = arith.constant 0 : index
    %c0_9 = arith.constant 0 : index
    %9 = vector.load %arg4[%c0_7, %c0_8, %c0_9] : memref<2x144x72xf32, #tpu.memory_space<vmem>>, vector<1x144x72xf32>
    %10 = vector.shape_cast %9 : vector<1x144x72xf32> to vector<144x72xf32>
    %cst_10 = arith.constant dense<0.000000e+00> : vector<192x72xf32>
    %11 = tpu.matmul %8, %10, %cst_10 {dimension_numbers = #tpu.dot_dimension_numbers<[1], [0], [0], [1], [0, 0, 1, 1], [], []>} : vector<192x144xf32>, vector<144x72xf32>, vector<192x72xf32> -> vector<192x72xf32>
    %c1 = arith.constant 1 : index
    %c0_11 = arith.constant 0 : index
    %c0_12 = arith.constant 0 : index
    %12 = vector.load %arg4[%c1, %c0_11, %c0_12] : memref<2x144x72xf32, #tpu.memory_space<vmem>>, vector<1x144x72xf32>
    %13 = vector.shape_cast %12 : vector<1x144x72xf32> to vector<144x72xf32>
    %cst_13 = arith.constant dense<0.000000e+00> : vector<192x72xf32>
    %14 = tpu.matmul %8, %13, %cst_13 {dimension_numbers = #tpu.dot_dimension_numbers<[1], [0], [0], [1], [0, 0, 1, 1], [], []>} : vector<192x144xf32>, vector<144x72xf32>, vector<192x72xf32> -> vector<192x72xf32>
    %15 = arith.maximumf %11, %14 : vector<192x72xf32>
    %16 = vector.shape_cast %15 : vector<192x72xf32> to vector<12x2x8x72xf32>
    %17 = vector.extract_strided_slice %16 {offsets = [0, 0, 0, 0], sizes = [12, 1, 8, 72], strides = [1, 1, 1, 1]} : vector<12x2x8x72xf32> to vector<12x1x8x72xf32>
    %18 = vector.shape_cast %17 : vector<12x1x8x72xf32> to vector<12x8x72xf32>
    %19 = vector.extract_strided_slice %16 {offsets = [0, 1, 0, 0], sizes = [12, 1, 8, 72], strides = [1, 1, 1, 1]} : vector<12x2x8x72xf32> to vector<12x1x8x72xf32>
    %20 = vector.shape_cast %19 : vector<12x1x8x72xf32> to vector<12x8x72xf32>
    %21 = arith.maximumf %18, %20 : vector<12x8x72xf32>
    %22 = vector.extract_strided_slice %21 {offsets = [0, 0, 0], sizes = [8, 8, 72], strides = [1, 1, 1]} : vector<12x8x72xf32> to vector<8x8x72xf32>
    %23 = vector.shape_cast %22 : vector<8x8x72xf32> to vector<64x72xf32>
    %c0_14 = arith.constant 0 : index
    %c0_15 = arith.constant 0 : index
    %c0_16 = arith.constant 0 : index
    %24 = vector.load %arg5[%c0_14, %c0_15, %c0_16] : memref<5x72x128xf32, #tpu.memory_space<vmem>>, vector<1x72x128xf32>
    %25 = vector.shape_cast %24 : vector<1x72x128xf32> to vector<72x128xf32>
    %cst_17 = arith.constant dense<0.000000e+00> : vector<64x128xf32>
    %26 = tpu.matmul %23, %25, %cst_17 {dimension_numbers = #tpu.dot_dimension_numbers<[1], [0], [0], [1], [0, 0, 1, 1], [], []>} : vector<64x72xf32>, vector<72x128xf32>, vector<64x128xf32> -> vector<64x128xf32>
    %27 = vector.extract_strided_slice %21 {offsets = [1, 0, 0], sizes = [8, 8, 72], strides = [1, 1, 1]} : vector<12x8x72xf32> to vector<8x8x72xf32>
    %28 = vector.shape_cast %27 : vector<8x8x72xf32> to vector<64x72xf32>
    %c1_18 = arith.constant 1 : index
    %c0_19 = arith.constant 0 : index
    %c0_20 = arith.constant 0 : index
    %29 = vector.load %arg5[%c1_18, %c0_19, %c0_20] : memref<5x72x128xf32, #tpu.memory_space<vmem>>, vector<1x72x128xf32>
    %30 = vector.shape_cast %29 : vector<1x72x128xf32> to vector<72x128xf32>
    %cst_21 = arith.constant dense<0.000000e+00> : vector<64x128xf32>
    %31 = tpu.matmul %28, %30, %cst_21 {dimension_numbers = #tpu.dot_dimension_numbers<[1], [0], [0], [1], [0, 0, 1, 1], [], []>} : vector<64x72xf32>, vector<72x128xf32>, vector<64x128xf32> -> vector<64x128xf32>
    %32 = arith.addf %26, %31 : vector<64x128xf32>
    %33 = vector.extract_strided_slice %21 {offsets = [2, 0, 0], sizes = [8, 8, 72], strides = [1, 1, 1]} : vector<12x8x72xf32> to vector<8x8x72xf32>
    %34 = vector.shape_cast %33 : vector<8x8x72xf32> to vector<64x72xf32>
    %c2 = arith.constant 2 : index
    %c0_22 = arith.constant 0 : index
    %c0_23 = arith.constant 0 : index
    %35 = vector.load %arg5[%c2, %c0_22, %c0_23] : memref<5x72x128xf32, #tpu.memory_space<vmem>>, vector<1x72x128xf32>
    %36 = vector.shape_cast %35 : vector<1x72x128xf32> to vector<72x128xf32>
    %cst_24 = arith.constant dense<0.000000e+00> : vector<64x128xf32>
    %37 = tpu.matmul %34, %36, %cst_24 {dimension_numbers = #tpu.dot_dimension_numbers<[1], [0], [0], [1], [0, 0, 1, 1], [], []>} : vector<64x72xf32>, vector<72x128xf32>, vector<64x128xf32> -> vector<64x128xf32>
    %38 = arith.addf %32, %37 : vector<64x128xf32>
    %39 = vector.extract_strided_slice %21 {offsets = [3, 0, 0], sizes = [8, 8, 72], strides = [1, 1, 1]} : vector<12x8x72xf32> to vector<8x8x72xf32>
    %40 = vector.shape_cast %39 : vector<8x8x72xf32> to vector<64x72xf32>
    %c3 = arith.constant 3 : index
    %c0_25 = arith.constant 0 : index
    %c0_26 = arith.constant 0 : index
    %41 = vector.load %arg5[%c3, %c0_25, %c0_26] : memref<5x72x128xf32, #tpu.memory_space<vmem>>, vector<1x72x128xf32>
    %42 = vector.shape_cast %41 : vector<1x72x128xf32> to vector<72x128xf32>
    %cst_27 = arith.constant dense<0.000000e+00> : vector<64x128xf32>
    %43 = tpu.matmul %40, %42, %cst_27 {dimension_numbers = #tpu.dot_dimension_numbers<[1], [0], [0], [1], [0, 0, 1, 1], [], []>} : vector<64x72xf32>, vector<72x128xf32>, vector<64x128xf32> -> vector<64x128xf32>
    %44 = arith.addf %38, %43 : vector<64x128xf32>
    %45 = vector.extract_strided_slice %21 {offsets = [4, 0, 0], sizes = [8, 8, 72], strides = [1, 1, 1]} : vector<12x8x72xf32> to vector<8x8x72xf32>
    %46 = vector.shape_cast %45 : vector<8x8x72xf32> to vector<64x72xf32>
    %c4 = arith.constant 4 : index
    %c0_28 = arith.constant 0 : index
    %c0_29 = arith.constant 0 : index
    %47 = vector.load %arg5[%c4, %c0_28, %c0_29] : memref<5x72x128xf32, #tpu.memory_space<vmem>>, vector<1x72x128xf32>
    %48 = vector.shape_cast %47 : vector<1x72x128xf32> to vector<72x128xf32>
    %cst_30 = arith.constant dense<0.000000e+00> : vector<64x128xf32>
    %49 = tpu.matmul %46, %48, %cst_30 {dimension_numbers = #tpu.dot_dimension_numbers<[1], [0], [0], [1], [0, 0, 1, 1], [], []>} : vector<64x72xf32>, vector<72x128xf32>, vector<64x128xf32> -> vector<64x128xf32>
    %50 = arith.addf %44, %49 : vector<64x128xf32>
    %c0_31 = arith.constant 0 : index
    %c0_32 = arith.constant 0 : index
    %51 = vector.load %arg6[%c0_31, %c0_32] : memref<1x128xf32, #tpu.memory_space<vmem>>, vector<1x128xf32>
    %52 = vector.broadcast %51 : vector<1x128xf32> to vector<64x128xf32>
    %53 = arith.addf %50, %52 : vector<64x128xf32>
    %cst_33 = arith.constant 0.000000e+00 : f32
    %54 = vector.broadcast %cst_33 : f32 to vector<64x128xf32>
    %55 = arith.maximumf %53, %54 : vector<64x128xf32>
    %c0_34 = arith.constant 0 : index
    %c0_35 = arith.constant 0 : index
    %c0_36 = arith.constant 0 : index
    %56 = vector.load %arg7[%c0_34, %c0_35, %c0_36] : memref<2x128x64xf32, #tpu.memory_space<vmem>>, vector<1x128x64xf32>
    %57 = vector.shape_cast %56 : vector<1x128x64xf32> to vector<128x64xf32>
    %cst_37 = arith.constant dense<0.000000e+00> : vector<64x64xf32>
    %58 = tpu.matmul %55, %57, %cst_37 {dimension_numbers = #tpu.dot_dimension_numbers<[1], [0], [0], [1], [0, 0, 1, 1], [], []>} : vector<64x128xf32>, vector<128x64xf32>, vector<64x64xf32> -> vector<64x64xf32>
    %c1_38 = arith.constant 1 : index
    %c0_39 = arith.constant 0 : index
    %c0_40 = arith.constant 0 : index
    %59 = vector.load %arg7[%c1_38, %c0_39, %c0_40] : memref<2x128x64xf32, #tpu.memory_space<vmem>>, vector<1x128x64xf32>
    %60 = vector.shape_cast %59 : vector<1x128x64xf32> to vector<128x64xf32>
    %cst_41 = arith.constant dense<0.000000e+00> : vector<64x64xf32>
    %61 = tpu.matmul %55, %60, %cst_41 {dimension_numbers = #tpu.dot_dimension_numbers<[1], [0], [0], [1], [0, 0, 1, 1], [], []>} : vector<64x128xf32>, vector<128x64xf32>, vector<64x64xf32> -> vector<64x64xf32>
    %62 = arith.maximumf %58, %61 : vector<64x64xf32>
    %63 = vector.shape_cast %62 : vector<64x64xf32> to vector<4x2x8x64xf32>
    %64 = vector.extract_strided_slice %63 {offsets = [0, 0, 0, 0], sizes = [4, 1, 8, 64], strides = [1, 1, 1, 1]} : vector<4x2x8x64xf32> to vector<4x1x8x64xf32>
    %65 = vector.shape_cast %64 : vector<4x1x8x64xf32> to vector<4x8x64xf32>
    %66 = vector.extract_strided_slice %63 {offsets = [0, 1, 0, 0], sizes = [4, 1, 8, 64], strides = [1, 1, 1, 1]} : vector<4x2x8x64xf32> to vector<4x1x8x64xf32>
    %67 = vector.shape_cast %66 : vector<4x1x8x64xf32> to vector<4x8x64xf32>
    %68 = arith.maximumf %65, %67 : vector<4x8x64xf32>
    %69 = vector.extract_strided_slice %68 {offsets = [0, 0, 0], sizes = [1, 8, 64], strides = [1, 1, 1]} : vector<4x8x64xf32> to vector<1x8x64xf32>
    %70 = vector.shape_cast %69 : vector<1x8x64xf32> to vector<8x64xf32>
    %c0_42 = arith.constant 0 : index
    %c0_43 = arith.constant 0 : index
    %c0_44 = arith.constant 0 : index
    %71 = vector.load %arg8[%c0_42, %c0_43, %c0_44] : memref<4x64x120xf32, #tpu.memory_space<vmem>>, vector<1x64x120xf32>
    %72 = vector.shape_cast %71 : vector<1x64x120xf32> to vector<64x120xf32>
    %cst_45 = arith.constant dense<0.000000e+00> : vector<8x120xf32>
    %73 = tpu.matmul %70, %72, %cst_45 {dimension_numbers = #tpu.dot_dimension_numbers<[1], [0], [0], [1], [0, 0, 1, 1], [], []>} : vector<8x64xf32>, vector<64x120xf32>, vector<8x120xf32> -> vector<8x120xf32>
    %74 = vector.extract_strided_slice %68 {offsets = [1, 0, 0], sizes = [1, 8, 64], strides = [1, 1, 1]} : vector<4x8x64xf32> to vector<1x8x64xf32>
    %75 = vector.shape_cast %74 : vector<1x8x64xf32> to vector<8x64xf32>
    %c1_46 = arith.constant 1 : index
    %c0_47 = arith.constant 0 : index
    %c0_48 = arith.constant 0 : index
    %76 = vector.load %arg8[%c1_46, %c0_47, %c0_48] : memref<4x64x120xf32, #tpu.memory_space<vmem>>, vector<1x64x120xf32>
    %77 = vector.shape_cast %76 : vector<1x64x120xf32> to vector<64x120xf32>
    %cst_49 = arith.constant dense<0.000000e+00> : vector<8x120xf32>
    %78 = tpu.matmul %75, %77, %cst_49 {dimension_numbers = #tpu.dot_dimension_numbers<[1], [0], [0], [1], [0, 0, 1, 1], [], []>} : vector<8x64xf32>, vector<64x120xf32>, vector<8x120xf32> -> vector<8x120xf32>
    %79 = arith.addf %73, %78 : vector<8x120xf32>
    %80 = vector.extract_strided_slice %68 {offsets = [2, 0, 0], sizes = [1, 8, 64], strides = [1, 1, 1]} : vector<4x8x64xf32> to vector<1x8x64xf32>
    %81 = vector.shape_cast %80 : vector<1x8x64xf32> to vector<8x64xf32>
    %c2_50 = arith.constant 2 : index
    %c0_51 = arith.constant 0 : index
    %c0_52 = arith.constant 0 : index
    %82 = vector.load %arg8[%c2_50, %c0_51, %c0_52] : memref<4x64x120xf32, #tpu.memory_space<vmem>>, vector<1x64x120xf32>
    %83 = vector.shape_cast %82 : vector<1x64x120xf32> to vector<64x120xf32>
    %cst_53 = arith.constant dense<0.000000e+00> : vector<8x120xf32>
    %84 = tpu.matmul %81, %83, %cst_53 {dimension_numbers = #tpu.dot_dimension_numbers<[1], [0], [0], [1], [0, 0, 1, 1], [], []>} : vector<8x64xf32>, vector<64x120xf32>, vector<8x120xf32> -> vector<8x120xf32>
    %85 = arith.addf %79, %84 : vector<8x120xf32>
    %86 = vector.extract_strided_slice %68 {offsets = [3, 0, 0], sizes = [1, 8, 64], strides = [1, 1, 1]} : vector<4x8x64xf32> to vector<1x8x64xf32>
    %87 = vector.shape_cast %86 : vector<1x8x64xf32> to vector<8x64xf32>
    %c3_54 = arith.constant 3 : index
    %c0_55 = arith.constant 0 : index
    %c0_56 = arith.constant 0 : index
    %88 = vector.load %arg8[%c3_54, %c0_55, %c0_56] : memref<4x64x120xf32, #tpu.memory_space<vmem>>, vector<1x64x120xf32>
    %89 = vector.shape_cast %88 : vector<1x64x120xf32> to vector<64x120xf32>
    %cst_57 = arith.constant dense<0.000000e+00> : vector<8x120xf32>
    %90 = tpu.matmul %87, %89, %cst_57 {dimension_numbers = #tpu.dot_dimension_numbers<[1], [0], [0], [1], [0, 0, 1, 1], [], []>} : vector<8x64xf32>, vector<64x120xf32>, vector<8x120xf32> -> vector<8x120xf32>
    %91 = arith.addf %85, %90 : vector<8x120xf32>
    %c0_58 = arith.constant 0 : index
    %c0_59 = arith.constant 0 : index
    %92 = vector.load %arg9[%c0_58, %c0_59] : memref<1x120xf32, #tpu.memory_space<vmem>>, vector<1x120xf32>
    %93 = vector.broadcast %92 : vector<1x120xf32> to vector<8x120xf32>
    %94 = arith.addf %91, %93 : vector<8x120xf32>
    %cst_60 = arith.constant 0.000000e+00 : f32
    %95 = vector.broadcast %cst_60 : f32 to vector<8x120xf32>
    %96 = arith.maximumf %94, %95 : vector<8x120xf32>
    %c0_61 = arith.constant 0 : index
    %c0_62 = arith.constant 0 : index
    %97 = vector.load %arg10[%c0_61, %c0_62] : memref<120x84xf32, #tpu.memory_space<vmem>>, vector<120x84xf32>
    %cst_63 = arith.constant dense<0.000000e+00> : vector<8x84xf32>
    %98 = tpu.matmul %96, %97, %cst_63 {dimension_numbers = #tpu.dot_dimension_numbers<[1], [0], [0], [1], [0, 0, 1, 1], [], []>} : vector<8x120xf32>, vector<120x84xf32>, vector<8x84xf32> -> vector<8x84xf32>
    %c0_64 = arith.constant 0 : index
    %c0_65 = arith.constant 0 : index
    %99 = vector.load %arg11[%c0_64, %c0_65] : memref<1x84xf32, #tpu.memory_space<vmem>>, vector<1x84xf32>
    %100 = vector.broadcast %99 : vector<1x84xf32> to vector<8x84xf32>
    %101 = arith.addf %98, %100 : vector<8x84xf32>
    %cst_66 = arith.constant 0.000000e+00 : f32
    %102 = vector.broadcast %cst_66 : f32 to vector<8x84xf32>
    %103 = arith.maximumf %101, %102 : vector<8x84xf32>
    %c0_67 = arith.constant 0 : index
    %c0_68 = arith.constant 0 : index
    %104 = vector.load %arg12[%c0_67, %c0_68] : memref<84x128xf32, #tpu.memory_space<vmem>>, vector<84x128xf32>
    %cst_69 = arith.constant dense<0.000000e+00> : vector<8x128xf32>
    %105 = tpu.matmul %103, %104, %cst_69 {dimension_numbers = #tpu.dot_dimension_numbers<[1], [0], [0], [1], [0, 0, 1, 1], [], []>} : vector<8x84xf32>, vector<84x128xf32>, vector<8x128xf32> -> vector<8x128xf32>
    %c0_70 = arith.constant 0 : index
    %c0_71 = arith.constant 0 : index
    %106 = vector.load %arg13[%c0_70, %c0_71] : memref<1x128xf32, #tpu.memory_space<vmem>>, vector<1x128xf32>
    %107 = vector.broadcast %106 : vector<1x128xf32> to vector<8x128xf32>
    %108 = arith.addf %105, %107 : vector<8x128xf32>
    %c0_72 = arith.constant 0 : index
    %c0_73 = arith.constant 0 : index
    %109 = vector.load %arg14[%c0_72, %c0_73] : memref<8x128xf32, #tpu.memory_space<vmem>>, vector<8x128xf32>
    tpu.vector_store %arg14[%c0_72, %c0_73], %108 {strides = array<i32>} : memref<8x128xf32, #tpu.memory_space<vmem>>, vector<8x128xf32>,
    return
  }
  func.func @transform_0(%arg0: i32) -> (i32, i32, i32) {
    %c0_i32 = arith.constant 0 : i32
    %c0_i32_0 = arith.constant 0 : i32
    %c0_i32_1 = arith.constant 0 : i32
    return %c0_i32, %arg0, %c0_i32_0 : i32, i32, i32
  }
  func.func @transform_1(%arg0: i32) -> (i32, i32) {
    %c0_i32 = arith.constant 0 : i32
    %c0_i32_0 = arith.constant 0 : i32
    %c0_i32_1 = arith.constant 0 : i32
    return %c0_i32, %c0_i32_0 : i32, i32
  }
  func.func @transform_2(%arg0: i32) -> (i32, i32) {
    %c0_i32 = arith.constant 0 : i32
    %c0_i32_0 = arith.constant 0 : i32
    %c0_i32_1 = arith.constant 0 : i32
    return %c0_i32, %c0_i32_0 : i32, i32
  }
  func.func @transform_3(%arg0: i32) -> (i32, i32, i32) {
    %c0_i32 = arith.constant 0 : i32
    %c0_i32_0 = arith.constant 0 : i32
    %c0_i32_1 = arith.constant 0 : i32
    %c0_i32_2 = arith.constant 0 : i32
    return %c0_i32, %c0_i32_0, %c0_i32_1 : i32, i32, i32
  }
  func.func @transform_4(%arg0: i32) -> (i32, i32, i32) {
    %c0_i32 = arith.constant 0 : i32
    %c0_i32_0 = arith.constant 0 : i32
    %c0_i32_1 = arith.constant 0 : i32
    %c0_i32_2 = arith.constant 0 : i32
    return %c0_i32, %c0_i32_0, %c0_i32_1 : i32, i32, i32
  }
  func.func @transform_5(%arg0: i32) -> (i32, i32) {
    %c0_i32 = arith.constant 0 : i32
    %c0_i32_0 = arith.constant 0 : i32
    %c0_i32_1 = arith.constant 0 : i32
    return %c0_i32, %c0_i32_0 : i32, i32
  }
  func.func @transform_6(%arg0: i32) -> (i32, i32, i32) {
    %c0_i32 = arith.constant 0 : i32
    %c0_i32_0 = arith.constant 0 : i32
    %c0_i32_1 = arith.constant 0 : i32
    %c0_i32_2 = arith.constant 0 : i32
    return %c0_i32, %c0_i32_0, %c0_i32_1 : i32, i32, i32
  }
  func.func @transform_7(%arg0: i32) -> (i32, i32, i32) {
    %c0_i32 = arith.constant 0 : i32
    %c0_i32_0 = arith.constant 0 : i32
    %c0_i32_1 = arith.constant 0 : i32
    %c0_i32_2 = arith.constant 0 : i32
    return %c0_i32, %c0_i32_0, %c0_i32_1 : i32, i32, i32
  }
  func.func @transform_8(%arg0: i32) -> (i32, i32) {
    %c0_i32 = arith.constant 0 : i32
    %c0_i32_0 = arith.constant 0 : i32
    %c0_i32_1 = arith.constant 0 : i32
    return %c0_i32, %c0_i32_0 : i32, i32
  }
  func.func @transform_9(%arg0: i32) -> (i32, i32) {
    %c0_i32 = arith.constant 0 : i32
    %c0_i32_0 = arith.constant 0 : i32
    %c0_i32_1 = arith.constant 0 : i32
    return %c0_i32, %c0_i32_0 : i32, i32
  }
  func.func @transform_10(%arg0: i32) -> (i32, i32) {
    %c0_i32 = arith.constant 0 : i32
    %c0_i32_0 = arith.constant 0 : i32
    %c0_i32_1 = arith.constant 0 : i32
    return %c0_i32, %c0_i32_0 : i32, i32
  }
  func.func @transform_11(%arg0: i32) -> (i32, i32) {
    %c0_i32 = arith.constant 0 : i32
    %c0_i32_0 = arith.constant 0 : i32
    %c0_i32_1 = arith.constant 0 : i32
    return %c0_i32, %c0_i32_0 : i32, i32
  }
  func.func @transform_12(%arg0: i32) -> (i32, i32) {
    %c0_i32 = arith.constant 0 : i32
    %c0_i32_0 = arith.constant 0 : i32
    %c0_i32_1 = arith.constant 0 : i32
    return %c0_i32, %c0_i32_0 : i32, i32
  }
  func.func @transform_13(%arg0: i32) -> (i32, i32) {
    %c0_i32 = arith.constant 0 : i32
    %c0_i32_0 = arith.constant 0 : i32
    return %arg0, %c0_i32 : i32, i32
  }
}

</mosaic_0001>

<bundles_post_ra>
// kernel: classifier_mnist_forward.1
= control target key start
LH: loop header
LB: loop body
LE: loop exit
PB: predicated region body
PF: predicated region fallthrough
CT: control target
= control target key end

     0   :  { %vm207_vm0 = vcmask 1043456   ;;  %vm134_vm1 = vcmask 97280   ;;  %vm636_vm2 = vcmask 130048   ;;  %vm1139_vm3 = vcmask 588800   ;;  %s3560_s1 = inlined_call_operand.vmem [shape: f32[140,144], index: 1, kind: input, shape index: {}]   ;;  %s3561_s0 = inlined_call_operand.vmem [shape: f32[24,8,140], index: 0, kind: input, shape index: {}]   ;;  %s3562_s3 = inlined_call_operand.vmem [shape: f32[2,144,72], index: 3, kind: input, shape index: {}]   ;;  %s3563_s2 = inlined_call_operand.vmem [shape: f32[1,144], index: 2, kind: input, shape index: {}]   ;;  %s3564_s4 = inlined_call_operand.vmem [shape: f32[5,72,128], index: 4, kind: input, shape index: {}]   ;;  %s3565_s5 = inlined_call_operand.vmem [shape: f32[1,128], index: 5, kind: input, shape index: {}]   ;;  %s3566_s6 = inlined_call_operand.vmem [shape: f32[2,128,64], index: 6, kind: input, shape index: {}]   ;;  %s3567_s7 = inlined_call_operand.vmem [shape: f32[4,64,120], index: 7, kind: input, shape index: {}]   ;;  %s3568_s9 = inlined_call_operand.vmem [shape: f32[120,84], index: 9, kind: input, shape index: {}]   ;;  %s3569_s8 = inlined_call_operand.vmem [shape: f32[1,120], index: 8, kind: input, shape index: {}]   ;;  %s3570_s10 = inlined_call_operand.vmem [shape: f32[1,84], index: 10, kind: input, shape index: {}]   ;;  %s3571_s11 = inlined_call_operand.vmem [shape: f32[84,128], index: 11, kind: input, shape index: {}]   ;;  %s3572_s12 = inlined_call_operand.vmem [shape: f32[1,128], index: 12, kind: input, shape index: {}]   ;;  %s3573_s13 = inlined_call_operand.vmem [shape: f32[8,128], index: 13, kind: output, shape index: {}]  }
   0x1   :  { %v122_v0 = vld [vmem:[%s3560_s1 + $0xf0] sm:$0xff]  ;;  %v123_v2 = vld [vmem:[%s3560_s1 + $0xf8] sm:$0xff]  ;;  %v120_v4 = vld [vmem:[%s3560_s1 + $0xe0] sm:$0xff]  ;;  %vm1599_vm4 = vcmask 523264   ;;  %vm1737_vm5 = vcmask 982016   ;;  %vm1777_vm6 = vcmask 687104  }
   0x2   :  { %v126_v1 = vld [vmem:[%s3560_s1 + $0x110] sm:$0xf]  ;;  %214 = vmatpush.msra.mxu0 %v122_v0  ;;  %v127_v3 = vld [vmem:[%s3560_s1 + $0x118] sm:$0xf]  ;;  %v124_v5 = vld [vmem:[%s3560_s1 + $0x100] sm:$0xff]  ;;  %392 = vmatpush.msra.mxu2 %v123_v2 }
   0x3   :  { %1809 = vmatpush.msk.msra.mxu1 %vm207_vm0, %v126_v1  ;;  %1834 = vmatpush.msk.msra.mxu3 %vm207_vm0, %v127_v3  ;;  %v121_v6 = vld [vmem:[%s3560_s1 + $0xe8] sm:$0xff]  ;;  %v118_v9 = vld [vmem:[%s3560_s1 + $0xd0] sm:$0xff]  ;;  %v119_v10 = vld [vmem:[%s3560_s1 + $0xd8] sm:$0xff] }
   0x4   :  { %v125_v7 = vld [vmem:[%s3560_s1 + $0x108] sm:$0xff]  ;;  %215 = vmatpush.msra.mxu0 %v120_v4  ;;  %393 = vmatpush.msra.mxu2 %v121_v6  ;;  %v116_v11 = vld [vmem:[%s3560_s1 + $0xc0] sm:$0xff]  ;;  %v114_v13 = vld [vmem:[%s3560_s1 + $0xb0] sm:$0xff] }
   0x5   :  { %v45_v8 = vld [vmem:[%s3561_s0 + $0x8] sm:$0xff]  ;;  %318 = vmatpush.msra.mxu1 %v124_v5  ;;  %496 = vmatpush.msra.mxu3 %v125_v7  ;;  %v115_v14 = vld [vmem:[%s3560_s1 + $0xb8] sm:$0xff]  ;;  %v112_v15 = vld [vmem:[%s3560_s1 + $0xa0] sm:$0xff] }
   0x6   :  { %1810 = vmatmul.msk.f32.vlgmr.msra.gmra.mxu1 %vm134_vm1, %v45_v8  ;;  %1835 = vmatmul.msk.f32.vlgmr.msra.gmra.mxu3 %vm134_vm1, %v45_v8  ;;  %v117_v12 = vld [vmem:[%s3560_s1 + $0xc8] sm:$0xff]  ;;  %v47_v17 = vld [vmem:[%s3561_s0 + $0x18] sm:$0xff]  ;;  %v110_v18 = vld [vmem:[%s3560_s1 + $0x90] sm:$0xff] }
   0x7   :  { %216 = vmatpush.msra.mxu0 %v118_v9  ;;  %394 = vmatpush.msra.mxu2 %v119_v10  ;;  %v113_v16 = vld [vmem:[%s3560_s1 + $0xa8] sm:$0xff]  ;;  %v111_v19 = vld [vmem:[%s3560_s1 + $0x98] sm:$0xff]  ;;  %v108_v20 = vld [vmem:[%s3560_s1 + $0x80] sm:$0xff] }
   0x8   :  { %v109_v21 = vld [vmem:[%s3560_s1 + $0x88] sm:$0xff]  ;;  %v633_v23 = vld [vmem:[%s3562_s3 + $0x78] sm:$0xff]  ;;  %v106_v24 = vld [vmem:[%s3560_s1 + $0x70] sm:$0xff] }
   0x9   :  { %217 = vmatpush.msra.mxu0 %v116_v11  ;;  %395 = vmatpush.msra.mxu2 %v117_v12  ;;  %v635_v22 = vld [vmem:[%s3562_s3 + $0x88] sm:$0xff]  ;;  %v107_v25 = vld [vmem:[%s3560_s1 + $0x78] sm:$0xff]  ;;  %v104_v26 = vld [vmem:[%s3560_s1 + $0x60] sm:$0xff] }
   0xa   :  { %812 = vmatpush.msrb.mxu3 %v635_v22  ;;  %709 = vmatpush.msrb.mxu1 %v633_v23  ;;  %v105_v27 = vld [vmem:[%s3560_s1 + $0x68] sm:$0xff]  ;;  %v632_v28 = vld [vmem:[%s3562_s3 + $0x70] sm:$0xff]  ;;  %v103_v31 = vld [vmem:[%s3560_s1 + $0x58] sm:$0xff] }
   0xb   :  { %218 = vmatpush.msra.mxu0 %v114_v13  ;;  %396 = vmatpush.msra.mxu2 %v115_v14  ;;  %v49_v29 = vld [vmem:[%s3561_s0 + $0x28] sm:$0xff]  ;;  %v102_v30 = vld [vmem:[%s3560_s1 + $0x50] sm:$0xff]  ;;  %v100_v32 = vld [vmem:[%s3560_s1 + $0x40] sm:$0xff] }
   0xc   :  { %710 = vmatpush.msrb.mxu1 %v632_v28  ;;  %v101_v33 = vld [vmem:[%s3560_s1 + $0x48] sm:$0xff]  ;;  %v98_v34 = vld [vmem:[%s3560_s1 + $0x30] sm:$0xff]  ;;  %v99_v35 = vld [vmem:[%s3560_s1 + $0x38] sm:$0xff] }
   0xd   :  { %219 = vmatpush.msra.mxu0 %v112_v15  ;;  %397 = vmatpush.msra.mxu2 %v113_v16  ;;  %v96_v36 = vld [vmem:[%s3560_s1 + $0x20] sm:$0xff]  ;;  %v97_v37 = vld [vmem:[%s3560_s1 + $0x28] sm:$0xff]  ;;  %v51_v38 = vld [vmem:[%s3561_s0 + $0x38] sm:$0xff] }
   0xe   :  { %1811 = vmatmul.msk.f32.gmra.mxu1 %vm134_vm1, %v47_v17  ;;  %1836 = vmatmul.msk.f32.gmra.mxu3 %vm134_vm1, %v47_v17  ;;  %v94_v39 = vld [vmem:[%s3560_s1 + $0x10] sm:$0xff]  ;;  %v95_v40 = vld [vmem:[%s3560_s1 + $0x18] sm:$0xff]  ;;  %v92_v41 = vld [vmem:[%s3560_s1] sm:$0xff] }
   0xf   :  { %220 = vmatpush.msra.mxu0 %v110_v18  ;;  %398 = vmatpush.msra.mxu2 %v111_v19  ;;  %v93_v42 = vld [vmem:[%s3560_s1 + $0x8] sm:$0xff]  ;;  %v44_v44 = vld [vmem:[%s3561_s0] sm:$0xff]  ;;  %v1900_v45 = vld [vmem:[%s3562_s3 + $0x118] sm:$0xff] }
  0x10   :  { %v631_v43 = vld [vmem:[%s3562_s3 + $0x68] sm:$0xff]  ;;  %v1897_v47 = vld [vmem:[%s3562_s3 + $0x100] sm:$0xff]  ;;  %v1896_v49 = vld [vmem:[%s3562_s3 + $0xf8] sm:$0xff] }
  0x11   :  { %221 = vmatpush.msra.mxu0 %v108_v20  ;;  %399 = vmatpush.msra.mxu2 %v109_v21  ;;  %v1898_v46 = vld [vmem:[%s3562_s3 + $0x108] sm:$0xff]  ;;  %v46_v50 = vld [vmem:[%s3561_s0 + $0x10] sm:$0xff]  ;;  %v630_v51 = vld [vmem:[%s3562_s3 + $0x60] sm:$0xff] }
  0x12   :  { %711 = vmatpush.msrb.mxu1 %v631_v43  ;;  %v53_v48 = vld [vmem:[%s3561_s0 + $0x48] sm:$0xff]  ;;  %v1895_v52 = vld [vmem:[%s3562_s3 + $0xf0] sm:$0xff]  ;;  %v55_v53 = vld [vmem:[%s3561_s0 + $0x58] sm:$0xff] }
  0x13   :  { %222 = vmatpush.msra.mxu0 %v106_v24  ;;  %400 = vmatpush.msra.mxu2 %v107_v25  ;;  %v48_v54 = vld [vmem:[%s3561_s0 + $0x20] sm:$0xff]  ;;  %v57_v55 = vld [vmem:[%s3561_s0 + $0x68] sm:$0xff]  ;;  %v629_v56 = vld [vmem:[%s3562_s3 + $0x58] sm:$0xff] }
  0x14   :  { %712 = vmatpush.msrb.mxu1 %v630_v51  ;;  %v1894_v57 = vld [vmem:[%s3562_s3 + $0xe8] sm:$0xff]  ;;  %v50_v58 = vld [vmem:[%s3561_s0 + $0x30] sm:$0xff]  ;;  %v59_v59 = vld [vmem:[%s3561_s0 + $0x78] sm:$0xff] }
  0x15   :  { %223 = vmatpush.msra.mxu0 %v104_v26  ;;  %401 = vmatpush.msra.mxu2 %v105_v27  ;;  %v52_v60 = vld [vmem:[%s3561_s0 + $0x40] sm:$0xff]  ;;  %v628_v61 = vld [vmem:[%s3562_s3 + $0x50] sm:$0xff]  ;;  %v61_v63 = vld [vmem:[%s3561_s0 + $0x88] sm:$0xff] }
  0x16   :  { %1812 = vmatmul.msk.f32.gmra.mxu1 %vm134_vm1, %v49_v29  ;;  %1837 = vmatmul.msk.f32.gmra.mxu3 %vm134_vm1, %v49_v29  ;;  %v1893_v62 = vld [vmem:[%s3562_s3 + $0xe0] sm:$0xff]  ;;  %v54_v0 = vld [vmem:[%s3561_s0 + $0x50] sm:$0xff]  ;;  %v63_v1 = vld [vmem:[%s3561_s0 + $0x98] sm:$0xff] }
  0x17   :  { %224 = vmatpush.msra.mxu0 %v102_v30  ;;  %402 = vmatpush.msra.mxu2 %v103_v31  ;;  %v627_v2 = vld [vmem:[%s3562_s3 + $0x48] sm:$0xff]  ;;  %v1892_v3 = vld [vmem:[%s3562_s3 + $0xd8] sm:$0xff]  ;;  %v56_v4 = vld [vmem:[%s3561_s0 + $0x60] sm:$0xff] }
  0x18   :  { %713 = vmatpush.msrb.mxu1 %v629_v56  ;;  %v65_v5 = vld [vmem:[%s3561_s0 + $0xa8] sm:$0xff]  ;;  %v58_v6 = vld [vmem:[%s3561_s0 + $0x70] sm:$0xff]  ;;  %v626_v7 = vld [vmem:[%s3562_s3 + $0x40] sm:$0xff] }
  0x19   :  { %225 = vmatpush.msra.mxu0 %v100_v32  ;;  %403 = vmatpush.msra.mxu2 %v101_v33  ;;  %v1891_v8 = vld [vmem:[%s3562_s3 + $0xd0] sm:$0xff]  ;;  %v67_v9 = vld [vmem:[%s3561_s0 + $0xb8] sm:$0xff]  ;;  %v60_v10 = vld [vmem:[%s3561_s0 + $0x80] sm:$0xff] }
  0x1a   :  { %714 = vmatpush.msrb.mxu1 %v628_v61  ;;  %v634_v11 = vld [vmem:[%s3562_s3 + $0x80] sm:$0xff]  ;;  %v1899_v12 = vld [vmem:[%s3562_s3 + $0x110] sm:$0xff]  ;;  %v69_v13 = vld [vmem:[%s3561_s0 + $0xc8] sm:$0xff] }
  0x1b   :  { %226 = vmatpush.msra.mxu0 %v98_v34  ;;  %404 = vmatpush.msra.mxu2 %v99_v35  ;;  %v625_v14 = vld [vmem:[%s3562_s3 + $0x38] sm:$0xff]  ;;  %v1890_v15 = vld [vmem:[%s3562_s3 + $0xc8] sm:$0xff]  ;;  %v62_v16 = vld [vmem:[%s3561_s0 + $0x90] sm:$0xff] }
  0x1c   :  { %715 = vmatpush.msrb.mxu1 %v627_v2  ;;  %813 = vmatpush.msrb.mxu3 %v634_v11  ;;  %v71_v17 = vld [vmem:[%s3561_s0 + $0xd8] sm:$0xff]  ;;  %v64_v18 = vld [vmem:[%s3561_s0 + $0xa0] sm:$0xff]  ;;  %v73_v19 = vld [vmem:[%s3561_s0 + $0xe8] sm:$0xff] }
  0x1d   :  { %227 = vmatpush.msra.mxu0 %v96_v36  ;;  %405 = vmatpush.msra.mxu2 %v97_v37  ;;  %v624_v20 = vld [vmem:[%s3562_s3 + $0x30] sm:$0xff]  ;;  %v1889_v21 = vld [vmem:[%s3562_s3 + $0xc0] sm:$0xff]  ;;  %v75_v23 = vld [vmem:[%s3561_s0 + $0xf8] sm:$0xff] }
  0x1e   :  { %1813 = vmatmul.msk.f32.gmra.mxu1 %vm134_vm1, %v51_v38  ;;  %1838 = vmatmul.msk.f32.gmra.mxu3 %vm134_vm1, %v51_v38  ;;  %v66_v22 = vld [vmem:[%s3561_s0 + $0xb0] sm:$0xff]  ;;  %v68_v24 = vld [vmem:[%s3561_s0 + $0xc0] sm:$0xff]  ;;  %v77_v26 = vld [vmem:[%s3561_s0 + $0x108] sm:$0xff] }
  0x1f   :  { %228 = vmatpush.msra.mxu0 %v94_v39  ;;  %406 = vmatpush.msra.mxu2 %v95_v40  ;;  %v623_v27 = vld [vmem:[%s3562_s3 + $0x28] sm:$0xff]  ;;  %v1888_v28 = vld [vmem:[%s3562_s3 + $0xb8] sm:$0xff]  ;;  %v70_v29 = vld [vmem:[%s3561_s0 + $0xd0] sm:$0xff] }
  0x20   :  { %716 = vmatpush.msrb.mxu1 %v626_v7  ;;  %v79_v32 = vld [vmem:[%s3561_s0 + $0x118] sm:$0xff]  ;;  %v622_v33 = vld [vmem:[%s3562_s3 + $0x20] sm:$0xff]  ;;  %v1887_v34 = vld [vmem:[%s3562_s3 + $0xb0] sm:$0xff] }
  0x21   :  { %229 = vmatpush.msra.mxu0 %v92_v41  ;;  %407 = vmatpush.msra.mxu2 %v93_v42  ;;  %v72_v35 = vld [vmem:[%s3561_s0 + $0xe0] sm:$0xff]  ;;  %v81_v38 = vld [vmem:[%s3561_s0 + $0x128] sm:$0xff]  ;;  %v74_v39 = vld [vmem:[%s3561_s0 + $0xf0] sm:$0xff] }
  0x22   :  { %230 = vmatmul.f32.vlgmr.msra.gmra.mxu0 %v44_v44  ;;  %408 = vmatmul.f32.vlgmr.msra.gmra.mxu2 %v44_v44  ;;  %v621_v41 = vld [vmem:[%s3562_s3 + $0x18] sm:$0xff]  ;;  %v1886_v42 = vld [vmem:[%s3562_s3 + $0xa8] sm:$0xff]  ;;  %v78_v56 = vld [vmem:[%s3561_s0 + $0x110] sm:$0xff] }
  0x23   :  { %1009 = vmatpush.msrb.mxu2 %v1900_v45  ;;  %906 = vmatpush.msrb.mxu0 %v1898_v46  ;;  %v83_v44 = vld [vmem:[%s3561_s0 + $0x138] sm:$0xff]  ;;  %v76_v46 = vld [vmem:[%s3561_s0 + $0x100] sm:$0xff]  ;;  %v85_v51 = vld [vmem:[%s3561_s0 + $0x148] sm:$0xff] }
  0x24   :  { %717 = vmatpush.msrb.mxu1 %v625_v14  ;;  %v89_v2 = vld [vmem:[%s3561_s0 + $0x168] sm:$0xff]  ;;  %v91_v11 = vld [vmem:[%s3561_s0 + $0x178] sm:$0xff] }
  0x25   :  { %907 = vmatpush.msrb.mxu0 %v1897_v47  ;;  %1010 = vmatpush.msrb.mxu2 %v1899_v12  ;;  %v620_v47 = vld [vmem:[%s3562_s3 + $0x10] sm:$0xff] }
  0x26   :  { %1814 = vmatmul.msk.f32.gmra.mxu1 %vm134_vm1, %v53_v48  ;;  %1839 = vmatmul.msk.f32.gmra.mxu3 %vm134_vm1, %v53_v48  ;;  %v1883_v12 = vld [vmem:[%s3562_s3 + $0x90] sm:$0xff] }
  0x27   :  { %908 = vmatpush.msrb.mxu0 %v1896_v49  ;;  %718 = vmatpush.msrb.mxu1 %v624_v20  ;;  %v619_v49 = vld [vmem:[%s3562_s3 + $0x8] sm:$0xff] }
  0x29   :  { %909 = vmatpush.msrb.mxu0 %v1895_v52  ;;  %719 = vmatpush.msrb.mxu1 %v623_v27  ;;  %v1885_v52 = vld [vmem:[%s3562_s3 + $0xa0] sm:$0xff] }
  0x2a   :  { %233 = vmatmul.f32.gmra.mxu0 %v46_v50  ;;  %411 = vmatmul.f32.gmra.mxu2 %v46_v50 }
  0x2b   :  { %910 = vmatpush.msrb.mxu0 %v1894_v57  ;;  %720 = vmatpush.msrb.mxu1 %v622_v33 }
  0x2d   :  { %911 = vmatpush.msrb.mxu0 %v1893_v62  ;;  %721 = vmatpush.msrb.mxu1 %v621_v41  ;;  %v80_v62 = vld [vmem:[%s3561_s0 + $0x120] sm:$0xff] }
  0x2e   :  { %1815 = vmatmul.msk.f32.gmra.mxu1 %vm134_vm1, %v55_v53  ;;  %1840 = vmatmul.msk.f32.gmra.mxu3 %vm134_vm1, %v55_v53  ;;  %v618_v53 = vld [vmem:[%s3562_s3] sm:$0xff] }
  0x2f   :  { %912 = vmatpush.msrb.mxu0 %v1892_v3  ;;  %722 = vmatpush.msrb.mxu1 %v620_v47  ;;  %v128_v3 = vld [vmem:[%s3563_s2] sm:$0x3] }
  0x30   :  { %v2541_v7 = vperm.slane %v128_v3, 0 }
  0x31   :  { %913 = vmatpush.msrb.mxu0 %v1891_v8  ;;  %723 = vmatpush.msrb.mxu1 %v619_v49  ;;  %v2543_v8 = vperm.slane %v128_v3, 1 }
  0x32   :  { %236 = vmatmul.f32.gmra.mxu0 %v48_v54  ;;  %414 = vmatmul.f32.gmra.mxu2 %v48_v54 }
  0x33   :  { %914 = vmatpush.msrb.mxu0 %v1890_v15  ;;  %724 = vmatpush.msrb.mxu1 %v618_v53 }
  0x35   :  { %915 = vmatpush.msrb.mxu0 %v1889_v21 }
  0x36   :  { %1816 = vmatmul.msk.f32.gmra.mxu1 %vm134_vm1, %v57_v55  ;;  %1841 = vmatmul.msk.f32.gmra.mxu3 %vm134_vm1, %v57_v55 }
  0x37   :  { %916 = vmatpush.msrb.mxu0 %v1888_v28  ;;  %v86_v28 = vld [vmem:[%s3561_s0 + $0x150] sm:$0xff] }
  0x39   :  { %917 = vmatpush.msrb.mxu0 %v1887_v34 }
  0x3a   :  { %239 = vmatmul.f32.gmra.mxu0 %v50_v58  ;;  %417 = vmatmul.f32.gmra.mxu2 %v50_v58 }
  0x3b   :  { %918 = vmatpush.msrb.mxu0 %v1886_v42 }
  0x3d   :  { %919 = vmatpush.msrb.mxu0 %v1885_v52 }
  0x3e   :  { %1817 = vmatmul.msk.f32.gmra.mxu1 %vm134_vm1, %v59_v59  ;;  %1842 = vmatmul.msk.f32.gmra.mxu3 %vm134_vm1, %v59_v59  ;;  %v87_v59 = vld [vmem:[%s3561_s0 + $0x158] sm:$0xff] }
  0x42   :  { %242 = vmatmul.f32.gmra.mxu0 %v52_v60  ;;  %420 = vmatmul.f32.gmra.mxu2 %v52_v60 }
  0x46   :  { %1818 = vmatmul.msk.f32.gmra.mxu1 %vm134_vm1, %v61_v63  ;;  %1843 = vmatmul.msk.f32.gmra.mxu3 %vm134_vm1, %v61_v63 }
  0x4a   :  { %245 = vmatmul.f32.gmra.mxu0 %v54_v0  ;;  %423 = vmatmul.f32.gmra.mxu2 %v54_v0  ;;  %v1884_v0 = vld [vmem:[%s3562_s3 + $0x98] sm:$0xff] }
  0x4b   :  { %920 = vmatpush.msrb.mxu0 %v1884_v0 }
  0x4d   :  { %921 = vmatpush.msrb.mxu0 %v1883_v12 }
  0x4e   :  { %1819 = vmatmul.msk.f32.gmra.mxu1 %vm134_vm1, %v63_v1  ;;  %1844 = vmatmul.msk.f32.gmra.mxu3 %vm134_vm1, %v63_v1 }
  0x52   :  { %248 = vmatmul.f32.gmra.mxu0 %v56_v4  ;;  %426 = vmatmul.f32.gmra.mxu2 %v56_v4 }
  0x56   :  { %1820 = vmatmul.msk.f32.gmra.mxu1 %vm134_vm1, %v65_v5  ;;  %1845 = vmatmul.msk.f32.gmra.mxu3 %vm134_vm1, %v65_v5 }
  0x5a   :  { %251 = vmatmul.f32.gmra.mxu0 %v58_v6  ;;  %429 = vmatmul.f32.gmra.mxu2 %v58_v6  ;;  %v82_v6 = vld [vmem:[%s3561_s0 + $0x130] sm:$0xff] }
  0x5e   :  { %1821 = vmatmul.msk.f32.gmra.mxu1 %vm134_vm1, %v67_v9  ;;  %1846 = vmatmul.msk.f32.gmra.mxu3 %vm134_vm1, %v67_v9 }
  0x62   :  { %254 = vmatmul.f32.gmra.mxu0 %v60_v10  ;;  %432 = vmatmul.f32.gmra.mxu2 %v60_v10 }
  0x66   :  { %1822 = vmatmul.msk.f32.gmra.mxu1 %vm134_vm1, %v69_v13  ;;  %1847 = vmatmul.msk.f32.gmra.mxu3 %vm134_vm1, %v69_v13 }
  0x6a   :  { %257 = vmatmul.f32.gmra.mxu0 %v62_v16  ;;  %435 = vmatmul.f32.gmra.mxu2 %v62_v16 }
  0x6e   :  { %1823 = vmatmul.msk.f32.gmra.mxu1 %vm134_vm1, %v71_v17  ;;  %1848 = vmatmul.msk.f32.gmra.mxu3 %vm134_vm1, %v71_v17  ;;  %v84_v17 = vld [vmem:[%s3561_s0 + $0x140] sm:$0xff] }
  0x72   :  { %260 = vmatmul.f32.gmra.mxu0 %v64_v18  ;;  %438 = vmatmul.f32.gmra.mxu2 %v64_v18 }
  0x76   :  { %1824 = vmatmul.msk.f32.gmra.mxu1 %vm134_vm1, %v73_v19  ;;  %1849 = vmatmul.msk.f32.gmra.mxu3 %vm134_vm1, %v73_v19 }
  0x7a   :  { %263 = vmatmul.f32.gmra.mxu0 %v66_v22  ;;  %441 = vmatmul.f32.gmra.mxu2 %v66_v22 }
  0x7e   :  { %1825 = vmatmul.msk.f32.gmra.mxu1 %vm134_vm1, %v75_v23  ;;  %1850 = vmatmul.msk.f32.gmra.mxu3 %vm134_vm1, %v75_v23 }
  0x82   :  { %266 = vmatmul.f32.gmra.mxu0 %v68_v24  ;;  %444 = vmatmul.f32.gmra.mxu2 %v68_v24 }
  0x83   :  { %v2423_v25 = vpop.f32.mrf.mxu1 }
  0x86   :  { %1826 = vmatmul.msk.f32.gmra.mxu1 %vm134_vm1, %v77_v26  ;;  %1851 = vmatmul.msk.f32.gmra.mxu3 %vm134_vm1, %v77_v26 }
  0x89   :  { %v2439_v30 = vpop.f32.mrf.mxu3 }
  0x8a   :  { %269 = vmatmul.f32.gmra.mxu0 %v70_v29  ;;  %447 = vmatmul.f32.gmra.mxu2 %v70_v29 }
  0x8b   :  { %v2441_v31 = vpop.f32.mrf.mxu1 }
  0x8e   :  { %1827 = vmatmul.msk.f32.gmra.mxu1 %vm134_vm1, %v79_v32  ;;  %1852 = vmatmul.msk.f32.gmra.mxu3 %vm134_vm1, %v79_v32 }
  0x91   :  { %v2457_v36 = vpop.f32.mrf.mxu3 }
  0x92   :  { %272 = vmatmul.f32.gmra.mxu0 %v72_v35  ;;  %450 = vmatmul.f32.gmra.mxu2 %v72_v35 }
  0x93   :  { %v2459_v37 = vpop.f32.mrf.mxu1 }
  0x96   :  { %1828 = vmatmul.msk.f32.gmra.mxu1 %vm134_vm1, %v81_v38  ;;  %1853 = vmatmul.msk.f32.gmra.mxu3 %vm134_vm1, %v81_v38 }
  0x99   :  { %v2469_v40 = vpop.f32.mrf.mxu3 }
  0x9a   :  { %275 = vmatmul.f32.gmra.mxu0 %v74_v39  ;;  %453 = vmatmul.f32.gmra.mxu2 %v74_v39 }
  0x9b   :  { %v2477_v43 = vpop.f32.mrf.mxu1 }
  0x9e   :  { %1829 = vmatmul.msk.f32.gmra.mxu1 %vm134_vm1, %v83_v44  ;;  %1854 = vmatmul.msk.f32.gmra.mxu3 %vm134_vm1, %v83_v44 }
  0x9f   :  { %v231_v45 = vpop.f32.mrf.mxu0 }
  0xa0   :  { %v232_v13 = vadd.f32 %v231_v45, %v2541_v7 }
  0xa1   :  { %v2490_v48 = vpop.f32.mrf.mxu3 }
  0xa2   :  { %278 = vmatmul.f32.gmra.mxu0 %v76_v46  ;;  %456 = vmatmul.f32.gmra.mxu2 %v76_v46  ;;  %v2563_v18 = vadd.f32 %v2423_v25, %v232_v13 }
  0xa3   :  { %v2495_v50 = vpop.f32.mrf.mxu1 }
  0xa4   :  { %v570_v22 = vmax.f32 %v2563_v18, 0.0 }
  0xa5   :  { %v409_v54 = vpop.f32.mrf.mxu2 }
  0xa6   :  { %1830 = vmatmul.msk.f32.gmra.mxu1 %vm134_vm1, %v85_v51  ;;  %1855 = vmatmul.msk.f32.gmra.mxu3 %vm134_vm1, %v85_v51  ;;  %v410_v14 = vadd.f32 %v409_v54, %v2543_v8 }
  0xa7   :  { %v234_v55 = vpop.f32.mrf.mxu0 }
  0xa8   :  { %v2566_v19 = vadd.f32 %v2439_v30, %v410_v14  ;;  %v235_v24 = vadd.f32 %v234_v55, %v2541_v7 }
  0xa9   :  { %v2511_v57 = vpop.f32.mrf.mxu3 }
  0xaa   :  { %281 = vmatmul.f32.gmra.mxu0 %v78_v56  ;;  %459 = vmatmul.f32.gmra.mxu2 %v78_v56  ;;  %v571_v23 = vmax.f32 %v2566_v19, 0.0  ;;  %v2581_v29 = vadd.f32 %v2441_v31, %v235_v24 }
  0xab   :  { %v2513_v58 = vpop.f32.mrf.mxu1 }
  0xac   :  { %v572_v39 = vmax.f32 %v2581_v29, 0.0 }
  0xad   :  { %v412_v60 = vpop.f32.mrf.mxu2 }
  0xae   :  { %1831 = vmatmul.msk.f32.gmra.mxu1 %vm134_vm1, %v87_v59  ;;  %1856 = vmatmul.msk.f32.gmra.mxu3 %vm134_vm1, %v87_v59  ;;  %v413_v26 = vadd.f32 %v412_v60, %v2543_v8  ;;  %v1933_v60 = vld [vmem:[%s3564_s4 + $0x88] sm:$0xff] }
  0xaf   :  { %v237_v61 = vpop.f32.mrf.mxu0  ;;  %1171 = vmatpush.msra.mxu1 %v1933_v60 }
  0xb0   :  { %v2584_v30 = vadd.f32 %v2457_v36, %v413_v26  ;;  %v238_v35 = vadd.f32 %v237_v61, %v2541_v7  ;;  %v88_v36 = vld [vmem:[%s3561_s0 + $0x160] sm:$0xff] }
  0xb1   :  { %v2523_v63 = vpop.f32.mrf.mxu3 }
  0xb2   :  { %284 = vmatmul.f32.gmra.mxu0 %v80_v62  ;;  %462 = vmatmul.f32.gmra.mxu2 %v80_v62  ;;  %v573_v34 = vmax.f32 %v2584_v30, 0.0  ;;  %v2599_v42 = vadd.f32 %v2459_v37, %v238_v35 }
  0xb3   :  { %v2528_v1 = vpop.f32.mrf.mxu1 }
  0xb4   :  { %v574_v52 = vmax.f32 %v2599_v42, 0.0 }
  0xb5   :  { %v415_v4 = vpop.f32.mrf.mxu2 }
  0xb6   :  { %1832 = vmatmul.msk.f32.gmra.mxu1 %vm134_vm1, %v89_v2  ;;  %1857 = vmatmul.msk.f32.gmra.mxu3 %vm134_vm1, %v89_v2  ;;  %v416_v38 = vadd.f32 %v415_v4, %v2543_v8 }
  0xb7   :  { %v240_v5 = vpop.f32.mrf.mxu0 }
  0xb8   :  { %v2602_v44 = vadd.f32 %v2469_v40, %v416_v38  ;;  %v241_v49 = vadd.f32 %v240_v5, %v2541_v7  ;;  %v90_v40 = vld [vmem:[%s3561_s0 + $0x170] sm:$0xff] }
  0xb9   :  { %v2545_v9 = vpop.f32.mrf.mxu3 }
  0xba   :  { %287 = vmatmul.f32.gmra.mxu0 %v82_v6  ;;  %465 = vmatmul.f32.gmra.mxu2 %v82_v6  ;;  %v575_v47 = vmax.f32 %v2602_v44, 0.0  ;;  %v2617_v54 = vadd.f32 %v2477_v43, %v241_v49 }
  0xbb   :  { %v2547_v10 = vpop.f32.mrf.mxu1 }
  0xbc   :  { %v576_v0 = vmax.f32 %v2617_v54, 0.0 }
  0xbd   :  { %v418_v15 = vpop.f32.mrf.mxu2 }
  0xbe   :  { %1833 = vmatmul.msk.f32.gmra.mxu1 %vm134_vm1, %v91_v11  ;;  %1858 = vmatmul.msk.f32.gmra.mxu3 %vm134_vm1, %v91_v11  ;;  %v419_v51 = vadd.f32 %v418_v15, %v2543_v8 }
  0xbf   :  { %v243_v16 = vpop.f32.mrf.mxu0 }
  0xc0   :  { %v2620_v55 = vadd.f32 %v2490_v48, %v419_v51  ;;  %v244_v62 = vadd.f32 %v243_v16, %v2541_v7 }
  0xc1   :  { %v2568_v20 = vpop.f32.mrf.mxu3 }
  0xc2   :  { %290 = vmatmul.f32.gmra.mxu0 %v84_v17  ;;  %468 = vmatmul.f32.gmra.mxu2 %v84_v17  ;;  %v577_v61 = vmax.f32 %v2620_v55, 0.0  ;;  %v333_v3 = vadd.f32 %v2495_v50, %v244_v62 }
  0xc3   :  { %v2570_v21 = vpop.f32.mrf.mxu1 }
  0xc4   :  { %v578_v14 = vmax.f32 %v333_v3, 0.0 }
  0xc5   :  { %v421_v25 = vpop.f32.mrf.mxu2 }
  0xc6   :  { %725 = vmatmul.f32.vlgmr.msrb.gmra.mxu1 %v570_v22  ;;  %1859 = vmatmul.msk.f32.vlgmr.msrb.gmra.mxu3 %vm636_vm2, %v571_v23  ;;  %v422_v43 = vadd.f32 %v421_v25, %v2543_v8 }
  0xc7   :  { %v246_v27 = vpop.f32.mrf.mxu0 }
  0xc8   :  { %v511_v4 = vadd.f32 %v2511_v57, %v422_v43  ;;  %v247_v12 = vadd.f32 %v246_v27, %v2541_v7 }
  0xc9   :  { %v2586_v32 = vpop.f32.mrf.mxu3 }
  0xca   :  { %293 = vmatmul.f32.gmra.mxu0 %v86_v28  ;;  %471 = vmatmul.f32.gmra.mxu2 %v86_v28  ;;  %v579_v11 = vmax.f32 %v511_v4, 0.0  ;;  %v336_v57 = vadd.f32 %v2513_v58, %v247_v12  ;;  %v1932_v28 = vld [vmem:[%s3564_s4 + $0x80] sm:$0xff] }
  0xcb   :  { %v2588_v33 = vpop.f32.mrf.mxu1  ;;  %1172 = vmatpush.msra.mxu1 %v1932_v28 }
  0xcc   :  { %v580_v24 = vmax.f32 %v336_v57, 0.0 }
  0xcd   :  { %v424_v41 = vpop.f32.mrf.mxu2 }
  0xce   :  { %728 = vmatmul.f32.gmra.mxu1 %v572_v39  ;;  %1860 = vmatmul.msk.f32.gmra.mxu3 %vm636_vm2, %v573_v34  ;;  %v425_v13 = vadd.f32 %v424_v41, %v2543_v8 }
  0xcf   :  { %v249_v31 = vpop.f32.mrf.mxu0 }
  0xd0   :  { %v514_v16 = vadd.f32 %v2523_v63, %v425_v13 }
  0xd1   :  { %v2604_v45 = vpop.f32.mrf.mxu3 }
  0xd2   :  { %296 = vmatmul.f32.gmra.mxu0 %v88_v36  ;;  %474 = vmatmul.f32.gmra.mxu2 %v88_v36  ;;  %v581_v19 = vmax.f32 %v514_v16, 0.0 }
  0xd3   :  { %v2606_v46 = vpop.f32.mrf.mxu1 }
  0xd5   :  { %v427_v53 = vpop.f32.mrf.mxu2 }
  0xd6   :  { %731 = vmatmul.f32.gmra.mxu1 %v574_v52  ;;  %1861 = vmatmul.msk.f32.gmra.mxu3 %vm636_vm2, %v575_v47 }
  0xd7   :  { %v252_v37 = vpop.f32.mrf.mxu0 }
  0xd9   :  { %v2622_v56 = vpop.f32.mrf.mxu3 }
  0xda   :  { %299 = vmatmul.f32.gmra.mxu0 %v90_v40  ;;  %477 = vmatmul.f32.gmra.mxu2 %v90_v40 }
  0xdb   :  { %v2624_v59 = vpop.f32.mrf.mxu1 }
  0xdd   :  { %v430_v48 = vpop.f32.mrf.mxu2 }
  0xde   :  { %734 = vmatmul.f32.gmra.mxu1 %v576_v0  ;;  %1862 = vmatmul.msk.f32.gmra.mxu3 %vm636_vm2, %v577_v61 }
  0xdf   :  { %v255_v2 = vpop.f32.mrf.mxu0 }
  0xe0   :  { %v256_v44 = vadd.f32 %v255_v2, %v2541_v7 }
  0xe1   :  { %v2636_v5 = vpop.f32.mrf.mxu3 }
  0xe2   :  { %922 = vmatmul.f32.vlgmr.msrb.gmra.mxu0 %v570_v22  ;;  %1901 = vmatmul.msk.f32.vlgmr.msrb.gmra.mxu2 %vm636_vm2, %v571_v23  ;;  %v250_v22 = vadd.f32 %v249_v31, %v2541_v7  ;;  %v428_v23 = vadd.f32 %v427_v53, %v2543_v8  ;;  %v2690_v51 = vadd.f32 %v2570_v21, %v256_v44 }
  0xe3   :  { %v2639_v6 = vpop.f32.mrf.mxu1 }
  0xe4   :  { %v2655_v63 = vadd.f32 %v2528_v1, %v250_v22  ;;  %v2658_v25 = vadd.f32 %v2545_v9, %v428_v23  ;;  %v253_v1 = vadd.f32 %v252_v37, %v2541_v7  ;;  %v586_v60 = vmax.f32 %v2690_v51, 0.0 }
  0xe5   :  { %v433_v15 = vpop.f32.mrf.mxu2 }
  0xe6   :  { %737 = vmatmul.f32.gmra.mxu1 %v578_v14  ;;  %1863 = vmatmul.msk.f32.gmra.mxu3 %vm636_vm2, %v579_v11  ;;  %v583_v30 = vmax.f32 %v2658_v25, 0.0  ;;  %v582_v9 = vmax.f32 %v2655_v63, 0.0  ;;  %v1958_v63 = vld [vmem:[%s3564_s4 + $0xd0] sm:$0xff] }
  0xe7   :  { %v258_v50 = vpop.f32.mrf.mxu0  ;;  %1269 = vmatpush.msra.mxu0 %v1958_v63 }
  0xe8   :  { %v259_v54 = vadd.f32 %v258_v50, %v2541_v7 }
  0xe9   :  { %v2646_v17 = vpop.f32.mrf.mxu3 }
  0xea   :  { %925 = vmatmul.f32.gmra.mxu0 %v572_v39  ;;  %1902 = vmatmul.msk.f32.gmra.mxu2 %vm636_vm2, %v573_v34  ;;  %v431_v34 = vadd.f32 %v430_v48, %v2543_v8  ;;  %v2674_v39 = vadd.f32 %v2547_v10, %v253_v1 }
  0xeb   :  { %v2649_v18 = vpop.f32.mrf.mxu1 }
  0xec   :  { %v2677_v41 = vadd.f32 %v2568_v20, %v431_v34  ;;  %v584_v49 = vmax.f32 %v2674_v39, 0.0 }
  0xed   :  { %v436_v26 = vpop.f32.mrf.mxu2 }
  0xee   :  { %740 = vmatmul.f32.gmra.mxu1 %v580_v24  ;;  %1864 = vmatmul.msk.f32.gmra.mxu3 %vm636_vm2, %v581_v19  ;;  %v585_v42 = vmax.f32 %v2677_v41, 0.0  ;;  %v437_v55 = vadd.f32 %v436_v26, %v2543_v8 }
  0xef   :  { %v261_v58 = vpop.f32.mrf.mxu0 }
  0xf0   :  { %v2711_v62 = vadd.f32 %v2604_v45, %v437_v55 }
  0xf1   :  { %v2660_v27 = vpop.f32.mrf.mxu3 }
  0xf2   :  { %928 = vmatmul.f32.gmra.mxu0 %v574_v52  ;;  %1903 = vmatmul.msk.f32.gmra.mxu2 %vm636_vm2, %v575_v47  ;;  %v434_v47 = vadd.f32 %v433_v15, %v2543_v8  ;;  %v589_v2 = vmax.f32 %v2711_v62, 0.0  ;;  %v1128_v15 = vld [vmem:[%s3564_s4 + $0x40] sm:$0xff] }
  0xf3   :  { %v2666_v29 = vpop.f32.mrf.mxu1  ;;  %1215 = vmatpush.msra.mxu3 %v1128_v15 }
  0xf4   :  { %v2693_v52 = vadd.f32 %v2586_v32, %v434_v47 }
  0xf5   :  { %v439_v35 = vpop.f32.mrf.mxu2 }
  0xf6   :  { %743 = vmatmul.f32.gmra.mxu1 %v582_v9  ;;  %1865 = vmatmul.msk.f32.gmra.mxu3 %vm636_vm2, %v583_v30  ;;  %v587_v40 = vmax.f32 %v2693_v52, 0.0  ;;  %v440_v3 = vadd.f32 %v439_v35, %v2543_v8  ;;  %v1127_v52 = vld [vmem:[%s3564_s4 + $0x38] sm:$0xff] }
  0xf7   :  { %v264_v38 = vpop.f32.mrf.mxu0  ;;  %1216 = vmatpush.msra.mxu3 %v1127_v52 }
  0xf8   :  { %v2730_v13 = vadd.f32 %v2622_v56, %v440_v3  ;;  %v265_v56 = vadd.f32 %v264_v38, %v2541_v7 }
  0xf9   :  { %v2679_v31 = vpop.f32.mrf.mxu3 }
  0xfa   :  { %931 = vmatmul.f32.gmra.mxu0 %v576_v0  ;;  %1904 = vmatmul.msk.f32.gmra.mxu2 %vm636_vm2, %v577_v61  ;;  %v2708_v61 = vadd.f32 %v2588_v33, %v259_v54  ;;  %v1931_v0 = vld [vmem:[%s3564_s4 + $0x78] sm:$0xff]  ;;  %v262_v33 = vadd.f32 %v261_v58, %v2541_v7  ;;  %v591_v57 = vmax.f32 %v2730_v13, 0.0 }
  0xfb   :  { %v2682_v36 = vpop.f32.mrf.mxu1  ;;  %1173 = vmatpush.msra.mxu1 %v1931_v0 }
  0xfc   :  { %v588_v45 = vmax.f32 %v2708_v61, 0.0  ;;  %v2727_v12 = vadd.f32 %v2606_v46, %v262_v33  ;;  %v1975_v46 = vld [vmem:[%s3564_s4 + $0x118] sm:$0xff]  ;;  %v1929_v33 = vld [vmem:[%s3564_s4 + $0x68] sm:$0xff] }
  0xfd   :  { %v442_v10 = vpop.f32.mrf.mxu2  ;;  %1331 = vmatpush.msra.mxu2 %v1975_v46 }
  0xfe   :  { %746 = vmatmul.f32.gmra.mxu1 %v584_v49  ;;  %1866 = vmatmul.msk.f32.gmra.mxu3 %vm636_vm2, %v585_v42  ;;  %v443_v16 = vadd.f32 %v442_v10, %v2543_v8 }
  0xff   :  { %v267_v20 = vpop.f32.mrf.mxu0 }
 0x100   :  { %v2754_v26 = vadd.f32 %v2636_v5, %v443_v16  ;;  %v268_v5 = vadd.f32 %v267_v20, %v2541_v7 }
 0x101   :  { %v2695_v53 = vpop.f32.mrf.mxu3 }
 0x102   :  { %934 = vmatmul.f32.gmra.mxu0 %v578_v14  ;;  %1905 = vmatmul.msk.f32.gmra.mxu2 %vm636_vm2, %v579_v11  ;;  %v593_v28 = vmax.f32 %v2754_v26, 0.0  ;;  %v2775_v35 = vadd.f32 %v2639_v6, %v268_v5 }
 0x103   :  { %v2698_v37 = vpop.f32.mrf.mxu1 }
 0x104   :  { %v594_v6 = vmax.f32 %v2775_v35, 0.0 }
 0x105   :  { %v445_v21 = vpop.f32.mrf.mxu2 }
 0x106   :  { %749 = vmatmul.f32.gmra.mxu1 %v586_v60  ;;  %1867 = vmatmul.msk.f32.gmra.mxu3 %vm636_vm2, %v587_v40 }
 0x107   :  { %v270_v32 = vpop.f32.mrf.mxu0 }
 0x108   :  { %v271_v44 = vadd.f32 %v270_v32, %v2541_v7 }
 0x109   :  { %v2713_v43 = vpop.f32.mrf.mxu3 }
 0x10a   :  { %937 = vmatmul.f32.gmra.mxu0 %v580_v24  ;;  %1906 = vmatmul.msk.f32.gmra.mxu2 %vm636_vm2, %v581_v19  ;;  %v590_v19 = vmax.f32 %v2727_v12, 0.0  ;;  %v2751_v24 = vadd.f32 %v2624_v59, %v265_v56  ;;  %v1930_v59 = vld [vmem:[%s3564_s4 + $0x70] sm:$0xff]  ;;  %v2797_v10 = vadd.f32 %v2649_v18, %v271_v44 }
 0x10b   :  { %v2719_v48 = vpop.f32.mrf.mxu1  ;;  %1174 = vmatpush.msra.mxu1 %v1930_v59  ;;  %v1126_v56 = vld [vmem:[%s3564_s4 + $0x30] sm:$0xff]  ;;  %v1973_v59 = vld [vmem:[%s3564_s4 + $0x108] sm:$0xff] }
 0x10c   :  { %v592_v1 = vmax.f32 %v2751_v24, 0.0  ;;  %1217 = vmatpush.msra.mxu3 %v1126_v56 }
 0x10d   :  { %v448_v4 = vpop.f32.mrf.mxu2  ;;  %1175 = vmatpush.msra.mxu1 %v1929_v33  ;;  %v1955_v33 = vld [vmem:[%s3564_s4 + $0xb8] sm:$0xff] }
 0x10e   :  { %752 = vmatmul.f32.gmra.mxu1 %v588_v45  ;;  %1868 = vmatmul.msk.f32.gmra.mxu3 %vm636_vm2, %v589_v2  ;;  %v449_v47 = vadd.f32 %v448_v4, %v2543_v8 }
 0x10f   :  { %v273_v11 = vpop.f32.mrf.mxu0 }
 0x110   :  { %v2800_v20 = vadd.f32 %v2660_v27, %v449_v47  ;;  %v274_v27 = vadd.f32 %v273_v11, %v2541_v7 }
 0x111   :  { %v2732_v14 = vpop.f32.mrf.mxu3 }
 0x112   :  { %940 = vmatmul.f32.gmra.mxu0 %v582_v9  ;;  %1907 = vmatmul.msk.f32.gmra.mxu2 %vm636_vm2, %v583_v30  ;;  %v446_v30 = vadd.f32 %v445_v21, %v2543_v8  ;;  %v597_v18 = vmax.f32 %v2800_v20, 0.0  ;;  %v2821_v61 = vadd.f32 %v2666_v29, %v274_v27 }
 0x113   :  { %v2738_v50 = vpop.f32.mrf.mxu1 }
 0x114   :  { %v2778_v38 = vadd.f32 %v2646_v17, %v446_v30  ;;  %v598_v4 = vmax.f32 %v2821_v61, 0.0 }
 0x115   :  { %v451_v22 = vpop.f32.mrf.mxu2 }
 0x116   :  { %755 = vmatmul.f32.gmra.mxu1 %v590_v19  ;;  %1869 = vmatmul.msk.f32.gmra.mxu3 %vm636_vm2, %v591_v57  ;;  %v452_v55 = vadd.f32 %v451_v22, %v2543_v8 }
 0x117   :  { %v276_v23 = vpop.f32.mrf.mxu0 }
 0x118   :  { %v2824_v62 = vadd.f32 %v2679_v31, %v452_v55  ;;  %v277_v3 = vadd.f32 %v276_v23, %v2541_v7 }
 0x119   :  { %v2756_v58 = vpop.f32.mrf.mxu3 }
 0x11a   :  { %943 = vmatmul.f32.gmra.mxu0 %v584_v49  ;;  %1908 = vmatmul.msk.f32.gmra.mxu2 %vm636_vm2, %v585_v42  ;;  %v595_v42 = vmax.f32 %v2778_v38, 0.0  ;;  %v599_v31 = vmax.f32 %v2824_v62, 0.0  ;;  %v2845_v13 = vadd.f32 %v2682_v36, %v277_v3 }
 0x11b   :  { %v2762_v25 = vpop.f32.mrf.mxu1 }
 0x11d   :  { %v454_v34 = vpop.f32.mrf.mxu2 }
 0x11e   :  { %758 = vmatmul.f32.gmra.mxu1 %v592_v1  ;;  %1870 = vmatmul.msk.f32.gmra.mxu3 %vm636_vm2, %v593_v28 }
 0x11f   :  { %v279_v9 = vpop.f32.mrf.mxu0 }
 0x120   :  { %v280_v36 = vadd.f32 %v279_v9, %v2541_v7 }
 0x121   :  { %v2780_v39 = vpop.f32.mrf.mxu3 }
 0x122   :  { %946 = vmatmul.f32.gmra.mxu0 %v586_v60  ;;  %1909 = vmatmul.msk.f32.gmra.mxu2 %vm636_vm2, %v587_v40  ;;  %v1974_v40 = vld [vmem:[%s3564_s4 + $0x110] sm:$0xff]  ;;  %v596_v60 = vmax.f32 %v2797_v10, 0.0  ;;  %v2870_v24 = vadd.f32 %v2698_v37, %v280_v36  ;;  %v1956_v37 = vld [vmem:[%s3564_s4 + $0xc0] sm:$0xff] }
 0x123   :  { %v2785_v41 = vpop.f32.mrf.mxu1  ;;  %1332 = vmatpush.msra.mxu2 %v1974_v40 }
 0x125   :  { %v457_v49 = vpop.f32.mrf.mxu2  ;;  %1333 = vmatpush.msra.mxu2 %v1973_v59 }
 0x126   :  { %761 = vmatmul.f32.gmra.mxu1 %v594_v6  ;;  %1871 = vmatmul.msk.f32.gmra.mxu3 %vm636_vm2, %v595_v42 }
 0x127   :  { %v2794_v17 = vpop.f32.mrf.mxu0 }
 0x128   :  { %v283_v5 = vadd.f32 %v2794_v17, %v2541_v7 }
 0x129   :  { %v2802_v51 = vpop.f32.mrf.mxu3 }
 0x12a   :  { %949 = vmatmul.f32.gmra.mxu0 %v588_v45  ;;  %1910 = vmatmul.msk.f32.gmra.mxu2 %vm636_vm2, %v589_v2  ;;  %v1957_v2 = vld [vmem:[%s3564_s4 + $0xc8] sm:$0xff]  ;;  %v455_v45 = vadd.f32 %v454_v34, %v2543_v8  ;;  %v2901_v35 = vadd.f32 %v2719_v48, %v283_v5 }
 0x12b   :  { %v2811_v54 = vpop.f32.mrf.mxu1  ;;  %1270 = vmatpush.msra.mxu0 %v1957_v2 }
 0x12c   :  { %v2848_v15 = vadd.f32 %v2695_v53, %v455_v45  ;;  %v458_v53 = vadd.f32 %v457_v49, %v2543_v8  ;;  %v604_v49 = vmax.f32 %v2901_v35, 0.0 }
 0x12d   :  { %v460_v21 = vpop.f32.mrf.mxu2  ;;  %1271 = vmatpush.msra.mxu0 %v1956_v37  ;;  %v1925_v37 = vld [vmem:[%s3564_s4 + $0x48] sm:$0xff] }
 0x12e   :  { %764 = vmatmul.f32.gmra.mxu1 %v596_v60  ;;  %1872 = vmatmul.msk.f32.gmra.mxu3 %vm636_vm2, %v597_v18  ;;  %v601_v16 = vmax.f32 %v2848_v15, 0.0  ;;  %v2873_v26 = vadd.f32 %v2713_v43, %v458_v53  ;;  %v461_v30 = vadd.f32 %v460_v21, %v2543_v8  ;;  %v1123_v15 = vld [vmem:[%s3564_s4 + $0x18] sm:$0xff]  ;;  %v1122_v53 = vld [vmem:[%s3564_s4 + $0x10] sm:$0xff] }
 0x12f   :  { %v285_v32 = vpop.f32.mrf.mxu0  ;;  %1272 = vmatpush.msra.mxu0 %v1955_v33 }
 0x130   :  { %v603_v43 = vmax.f32 %v2873_v26, 0.0  ;;  %v2904_v38 = vadd.f32 %v2732_v14, %v461_v30 }
 0x131   :  { %v2826_v0 = vpop.f32.mrf.mxu3 }
 0x132   :  { %952 = vmatmul.f32.gmra.mxu0 %v590_v19  ;;  %1911 = vmatmul.msk.f32.gmra.mxu2 %vm636_vm2, %v591_v57  ;;  %v600_v19 = vmax.f32 %v2845_v13, 0.0  ;;  %v605_v48 = vmax.f32 %v2904_v38, 0.0 }
 0x133   :  { %v2837_v29 = vpop.f32.mrf.mxu1 }
 0x135   :  { %v463_v11 = vpop.f32.mrf.mxu2 }
 0x136   :  { %767 = vmatmul.f32.gmra.mxu1 %v598_v4  ;;  %1873 = vmatmul.msk.f32.gmra.mxu3 %vm636_vm2, %v599_v31  ;;  %v464_v14 = vadd.f32 %v463_v11, %v2543_v8 }
 0x137   :  { %v288_v12 = vpop.f32.mrf.mxu0 }
 0x138   :  { %v2931_v52 = vadd.f32 %v2756_v58, %v464_v14  ;;  %v289_v58 = vadd.f32 %v288_v12, %v2541_v7  ;;  %v1124_v12 = vld [vmem:[%s3564_s4 + $0x20] sm:$0xff] }
 0x139   :  { %v2850_v46 = vpop.f32.mrf.mxu3 }
 0x13a   :  { %955 = vmatmul.f32.gmra.mxu0 %v592_v1  ;;  %1912 = vmatmul.msk.f32.gmra.mxu2 %vm636_vm2, %v593_v28  ;;  %v602_v1 = vmax.f32 %v2870_v24, 0.0  ;;  %v607_v55 = vmax.f32 %v2931_v52, 0.0  ;;  %v2956_v62 = vadd.f32 %v2762_v25, %v289_v58  ;;  %v1927_v25 = vld [vmem:[%s3564_s4 + $0x58] sm:$0xff] }
 0x13b   :  { %v2855_v57 = vpop.f32.mrf.mxu1 }
 0x13c   :  { %v608_v11 = vmax.f32 %v2956_v62, 0.0  ;;  %v1970_v62 = vld [vmem:[%s3564_s4 + $0xf0] sm:$0xff] }
 0x13d   :  { %v466_v22 = vpop.f32.mrf.mxu2 }
 0x13e   :  { %770 = vmatmul.f32.gmra.mxu1 %v600_v19  ;;  %1874 = vmatmul.msk.f32.gmra.mxu3 %vm636_vm2, %v601_v16 }
 0x13f   :  { %v2867_v23 = vpop.f32.mrf.mxu0 }
 0x140   :  { %v292_v45 = vadd.f32 %v2867_v23, %v2541_v7 }
 0x141   :  { %v2875_v63 = vpop.f32.mrf.mxu3 }
 0x142   :  { %958 = vmatmul.f32.gmra.mxu0 %v594_v6  ;;  %1913 = vmatmul.msk.f32.gmra.mxu2 %vm636_vm2, %v595_v42  ;;  %v1928_v42 = vld [vmem:[%s3564_s4 + $0x60] sm:$0xff]  ;;  %v286_v6 = vadd.f32 %v285_v32, %v2541_v7 }
 0x143   :  { %v2883_v28 = vpop.f32.mrf.mxu1  ;;  %1176 = vmatpush.msra.mxu1 %v1928_v42  ;;  %v1971_v42 = vld [vmem:[%s3564_s4 + $0xf8] sm:$0xff] }
 0x144   :  { %v2928_v20 = vadd.f32 %v2738_v50, %v286_v6  ;;  %v1972_v50 = vld [vmem:[%s3564_s4 + $0x100] sm:$0xff] }
 0x145   :  { %v469_v34 = vpop.f32.mrf.mxu2  ;;  %1334 = vmatpush.msra.mxu2 %v1972_v50  ;;  %1177 = vmatpush.msra.mxu1 %v1927_v25 }
 0x146   :  { %773 = vmatmul.f32.gmra.mxu1 %v602_v1  ;;  %1875 = vmatmul.msk.f32.gmra.mxu3 %vm636_vm2, %v603_v43  ;;  %v606_v21 = vmax.f32 %v2928_v20, 0.0 }
 0x147   :  { %v2898_v9 = vpop.f32.mrf.mxu0  ;;  %1335 = vmatpush.msra.mxu2 %v1971_v42 }
 0x148   :  { %v295_v24 = vadd.f32 %v2898_v9, %v2541_v7 }
 0x149   :  { %v2909_v44 = vpop.f32.mrf.mxu3  ;;  %1336 = vmatpush.msra.mxu2 %v1970_v62 }
 0x14a   :  { %961 = vmatmul.f32.gmra.mxu0 %v596_v60  ;;  %1914 = vmatmul.msk.f32.gmra.mxu2 %vm636_vm2, %v597_v18  ;;  %v1125_v18 = vld [vmem:[%s3564_s4 + $0x28] sm:$0xff]  ;;  %v467_v60 = vadd.f32 %v466_v22, %v2543_v8 }
 0x14b   :  { %v2914_v47 = vpop.f32.mrf.mxu1  ;;  %1218 = vmatpush.msra.mxu3 %v1125_v18  ;;  %v1954_v18 = vld [vmem:[%s3564_s4 + $0xb0] sm:$0xff] }
 0x14c   :  { %v2959_v2 = vadd.f32 %v2780_v39, %v467_v60  ;;  %1273 = vmatpush.msra.mxu0 %v1954_v18 }
 0x14d   :  { %v472_v17 = vpop.f32.mrf.mxu2  ;;  %1219 = vmatpush.msra.mxu3 %v1124_v12 }
 0x14e   :  { %776 = vmatmul.f32.gmra.mxu1 %v604_v49  ;;  %1876 = vmatmul.msk.f32.gmra.mxu3 %vm636_vm2, %v605_v48  ;;  %v609_v39 = vmax.f32 %v2959_v2, 0.0  ;;  %v473_v26 = vadd.f32 %v472_v17, %v2543_v8 }
 0x14f   :  { %v2925_v10 = vpop.f32.mrf.mxu0  ;;  %1220 = vmatpush.msra.mxu3 %v1123_v15 }
 0x151   :  { %v2933_v40 = vpop.f32.mrf.mxu3  ;;  %1221 = vmatpush.msra.mxu3 %v1122_v53  ;;  %v1950_v53 = vld [vmem:[%s3564_s4 + $0x90] sm:$0xff] }
 0x152   :  { %964 = vmatmul.f32.gmra.mxu0 %v598_v4  ;;  %1915 = vmatmul.msk.f32.gmra.mxu2 %vm636_vm2, %v599_v31  ;;  %v470_v4 = vadd.f32 %v469_v34, %v2543_v8  ;;  %v3036_v34 = vadd.f32 %v2826_v0, %v473_v26  ;;  %v298_v0 = vadd.f32 %v2925_v10, %v2541_v7 }
 0x153   :  { %v2939_v27 = vpop.f32.mrf.mxu1  ;;  %v819_v2 = vadd.f32 %v2933_v40, %v2914_v47  ;;  %v1969_v47 = vld [vmem:[%s3564_s4 + $0xe8] sm:$0xff] }
 0x154   :  { %v2996_v36 = vadd.f32 %v2802_v51, %v470_v4  ;;  %v1121_v51 = vld [vmem:[%s3564_s4 + $0x8] sm:$0xff]  ;;  %1337 = vmatpush.msra.mxu2 %v1969_v47  ;;  %v1988_v47 = vld [vmem:[%s3564_s4 + $0x140] sm:$0xff] }
 0x155   :  { %v475_v32 = vpop.f32.mrf.mxu2  ;;  %1222 = vmatpush.msra.mxu3 %v1121_v51 }
 0x156   :  { %779 = vmatmul.f32.gmra.mxu1 %v606_v21  ;;  %1877 = vmatmul.msk.f32.gmra.mxu3 %vm636_vm2, %v607_v55  ;;  %v611_v23 = vmax.f32 %v2996_v36, 0.0  ;;  %v476_v6 = vadd.f32 %v475_v32, %v2543_v8 }
 0x157   :  { %v2953_v61 = vpop.f32.mrf.mxu0 }
 0x158   :  { %v3064_v17 = vadd.f32 %v2850_v46, %v476_v6  ;;  %v301_v46 = vadd.f32 %v2953_v61, %v2541_v7  ;;  %v1952_v61 = vld [vmem:[%s3564_s4 + $0xa0] sm:$0xff] }
 0x159   :  { %v2964_v31 = vpop.f32.mrf.mxu3  ;;  %v1992_v6 = vld [vmem:[%s3564_s4 + $0x160] sm:$0xff] }
 0x15a   :  { %967 = vmatmul.f32.gmra.mxu0 %v600_v19  ;;  %1916 = vmatmul.msk.f32.gmra.mxu2 %vm636_vm2, %v601_v16  ;;  %v2993_v16 = vadd.f32 %v2785_v41, %v292_v45  ;;  %v1926_v41 = vld [vmem:[%s3564_s4 + $0x50] sm:$0xff]  ;;  %v822_v12 = vadd.f32 %v2964_v31, %v2939_v27 }
 0x15b   :  { %v2969_v3 = vpop.f32.mrf.mxu1  ;;  %1178 = vmatpush.msra.mxu1 %v1926_v41 }
 0x15c   :  { %v610_v59 = vmax.f32 %v2993_v16, 0.0 }
 0x15d   :  { %v478_v13 = vpop.f32.mrf.mxu2  ;;  %1179 = vmatpush.msra.mxu1 %v1925_v37 }
 0x15e   :  { %782 = vmatmul.f32.gmra.mxu1 %v608_v11  ;;  %1878 = vmatmul.msk.f32.gmra.mxu3 %vm636_vm2, %v609_v39  ;;  %v479_v50 = vadd.f32 %v478_v13, %v2543_v8 }
 0x15f   :  { %v2990_v56 = vpop.f32.mrf.mxu0  ;;  %1393 = vmatpush.msrb.mxu1 %v1992_v6  ;;  %v1984_v6 = vld [vmem:[%s3564_s4 + $0x120] sm:$0xff] }
 0x160   :  { %v3092_v7 = vadd.f32 %v2875_v63, %v479_v50 }
 0x161   :  { %v3001_v19 = vpop.f32.mrf.mxu3 }
 0x162   :  { %970 = vmatmul.f32.gmra.mxu0 %v602_v1  ;;  %1917 = vmatmul.msk.f32.gmra.mxu2 %vm636_vm2, %v603_v43  ;;  %v1120_v43 = vld [vmem:[%s3564_s4] sm:$0xff]  ;;  %v3033_v1 = vadd.f32 %v2811_v54, %v295_v24  ;;  %v613_v54 = vmax.f32 %v3036_v34, 0.0  ;;  %v825_v33 = vadd.f32 %v3001_v19, %v2969_v3  ;;  %v816_v3 = vadd.f32 %v2909_v44, %v2883_v28  ;;  %v1967_v28 = vld [vmem:[%s3564_s4 + $0xd8] sm:$0xff] }
 0x163   :  { %v3014_v22 = vpop.f32.mrf.mxu1  ;;  %1223 = vmatpush.msra.mxu3 %v1120_v43  ;;  %v1968_v19 = vld [vmem:[%s3564_s4 + $0xe0] sm:$0xff] }
 0x164   :  { %v612_v35 = vmax.f32 %v3033_v1, 0.0  ;;  %1338 = vmatpush.msra.mxu2 %v1968_v19 }
 0x165   :  { %v1012_v5 = vpop.f32.mrf.mxu2 }
 0x166   :  { %785 = vmatmul.f32.gmra.mxu1 %v610_v59  ;;  %1879 = vmatmul.msk.f32.gmra.mxu3 %vm636_vm2, %v611_v23 }
 0x167   :  { %v926_v30 = vpop.f32.mrf.mxu0  ;;  %1339 = vmatpush.msra.mxu2 %v1967_v28  ;;  %v1987_v28 = vld [vmem:[%s3564_s4 + $0x138] sm:$0xff] }
 0x169   :  { %v3038_v9 = vpop.f32.mrf.mxu3 }
 0x16a   :  { %973 = vmatmul.f32.gmra.mxu0 %v604_v49  ;;  %1918 = vmatmul.msk.f32.gmra.mxu2 %vm636_vm2, %v605_v48  ;;  %v3061_v48 = vadd.f32 %v2837_v29, %v298_v0  ;;  %v615_v29 = vmax.f32 %v3064_v17, 0.0  ;;  %v828_v37 = vadd.f32 %v3038_v9, %v3014_v22 }
 0x16b   :  { %v3052_v14 = vpop.f32.mrf.mxu1 }
 0x16c   :  { %v614_v58 = vmax.f32 %v3061_v48, 0.0 }
 0x16d   :  { %v1015_v49 = vpop.f32.mrf.mxu2 }
 0x16e   :  { %788 = vmatmul.f32.gmra.mxu1 %v612_v35  ;;  %1880 = vmatmul.msk.f32.gmra.mxu3 %vm636_vm2, %v613_v54  ;;  %v1016_v32 = vadd.f32 %v1015_v49, %v926_v30 }
 0x16f   :  { %v929_v38 = vpop.f32.mrf.mxu0 }
 0x170   :  { %v1085_v13 = vmax.f32 %v819_v2, %v1016_v32 }
 0x171   :  { %v3066_v10 = vpop.f32.mrf.mxu3 }
 0x172   :  { %976 = vmatmul.f32.gmra.mxu0 %v606_v21  ;;  %1919 = vmatmul.msk.f32.gmra.mxu2 %vm636_vm2, %v607_v55  ;;  %v3089_v55 = vadd.f32 %v2855_v57, %v301_v46  ;;  %v1953_v21 = vld [vmem:[%s3564_s4 + $0xa8] sm:$0xff]  ;;  %v617_v57 = vmax.f32 %v3092_v7, 0.0  ;;  %v831_v43 = vadd.f32 %v3066_v10, %v3052_v14  ;;  %v1990_v7 = vld [vmem:[%s3564_s4 + $0x150] sm:$0xff] }
 0x173   :  { %v3081_v60 = vpop.f32.mrf.mxu1  ;;  %1274 = vmatpush.msra.mxu0 %v1953_v21 }
 0x174   :  { %v616_v63 = vmax.f32 %v3089_v55, 0.0 }
 0x175   :  { %v1018_v20 = vpop.f32.mrf.mxu2  ;;  %1275 = vmatpush.msra.mxu0 %v1952_v61 }
 0x176   :  { %791 = vmatmul.f32.gmra.mxu1 %v614_v58  ;;  %1881 = vmatmul.msk.f32.gmra.mxu3 %vm636_vm2, %v615_v29  ;;  %v1019_v45 = vadd.f32 %v1018_v20, %v929_v38  ;;  %v1991_v20 = vld [vmem:[%s3564_s4 + $0x158] sm:$0xff] }
 0x177   :  { %v932_v52 = vpop.f32.mrf.mxu0  ;;  %1394 = vmatpush.msrb.mxu1 %v1991_v20 }
 0x178   :  { %v1086_v24 = vmax.f32 %v822_v12, %v1019_v45  ;;  %v1989_v45 = vld [vmem:[%s3564_s4 + $0x148] sm:$0xff] }
 0x179   :  { %v3094_v8 = vpop.f32.mrf.mxu3  ;;  %1395 = vmatpush.msrb.mxu1 %v1990_v7 }
 0x17a   :  { %979 = vmatmul.f32.gmra.mxu0 %v608_v11  ;;  %1920 = vmatmul.msk.f32.gmra.mxu2 %vm636_vm2, %v609_v39  ;;  %v1013_v39 = vadd.f32 %v1012_v5, %v2990_v56  ;;  %v1951_v11 = vld [vmem:[%s3564_s4 + $0x98] sm:$0xff]  ;;  %v834_v38 = vadd.f32 %v3094_v8, %v3081_v60 }
 0x17b   :  { %1276 = vmatpush.msra.mxu0 %v1951_v11  ;;  %v747_v15 = vpop.f32.mrf.mxu1  ;;  %1396 = vmatpush.msrb.mxu1 %v1989_v45 }
 0x17c   :  { %v1084_v51 = vmax.f32 %v816_v3, %v1013_v39 }
 0x17d   :  { %v1021_v25 = vpop.f32.mrf.mxu2  ;;  %1277 = vmatpush.msra.mxu0 %v1950_v53  ;;  %1397 = vmatpush.msrb.mxu1 %v1988_v47 }
 0x17e   :  { %v1022_v4 = vadd.f32 %v1021_v25, %v932_v52  ;;  %794 = vmatmul.f32.gmra.mxu1 %v616_v63  ;;  %1882 = vmatmul.msk.f32.gmra.mxu3 %vm636_vm2, %v617_v57  ;;  %v1108_v44 = vmax.f32 %v1084_v51, %v1085_v13 }
 0x17f   :  { %v935_v40 = vpop.f32.mrf.mxu0  ;;  %1398 = vmatpush.msrb.mxu1 %v1987_v28 }
 0x180   :  { %v1087_v56 = vmax.f32 %v825_v33, %v1022_v4 }
 0x181   :  { %v836_v41 = vpop.f32.mrf.mxu3 }
 0x182   :  { %982 = vmatmul.f32.gmra.mxu0 %v610_v59  ;;  %1921 = vmatmul.msk.f32.gmra.mxu2 %vm636_vm2, %v611_v23  ;;  %v1109_v27 = vmax.f32 %v1086_v24, %v1087_v56  ;;  %v837_v48 = vadd.f32 %v836_v41, %v747_v15 }
 0x183   :  { %v750_v59 = vpop.f32.mrf.mxu1 }
 0x185   :  { %v1024_v31 = vpop.f32.mrf.mxu2 }
 0x186   :  { %1934 = vmatmul.msk.f32.vlgmr.msra.gmra.mxu1 %vm1139_vm3, %v1109_v27  ;;  %1942 = vmatmul.msk.f32.vlgmr.msra.gmra.mxu3 %vm1139_vm3, %v1108_v44  ;;  %v1025_v36 = vadd.f32 %v1024_v31, %v935_v40 }
 0x187   :  { %v938_v26 = vpop.f32.mrf.mxu0 }
 0x188   :  { %v1088_v42 = vmax.f32 %v828_v37, %v1025_v36 }
 0x189   :  { %v839_v16 = vpop.f32.mrf.mxu3 }
 0x18a   :  { %985 = vmatmul.f32.gmra.mxu0 %v612_v35  ;;  %1922 = vmatmul.msk.f32.gmra.mxu2 %vm636_vm2, %v613_v54 }
 0x18b   :  { %v753_v54 = vpop.f32.mrf.mxu1 }
 0x18d   :  { %v1027_v23 = vpop.f32.mrf.mxu2 }
 0x18e   :  { %v1028_v5 = vadd.f32 %v1027_v23, %v938_v26  ;;  %1943 = vmatmul.msk.f32.gmra.mxu3 %vm1139_vm3, %v1109_v27 }
 0x18f   :  { %v941_v30 = vpop.f32.mrf.mxu0 }
 0x190   :  { %v1089_v0 = vmax.f32 %v831_v43, %v1028_v5 }
 0x191   :  { %v842_v34 = vpop.f32.mrf.mxu3 }
 0x192   :  { %v1110_v1 = vmax.f32 %v1088_v42, %v1089_v0  ;;  %988 = vmatmul.f32.gmra.mxu0 %v614_v58  ;;  %1923 = vmatmul.msk.f32.gmra.mxu2 %vm636_vm2, %v615_v29  ;;  %v843_v32 = vadd.f32 %v842_v34, %v753_v54  ;;  %v1985_v54 = vld [vmem:[%s3564_s4 + $0x128] sm:$0xff] }
 0x193   :  { %v756_v17 = vpop.f32.mrf.mxu1 }
 0x194   :  { %1935 = vmatmul.msk.f32.gmra.mxu1 %vm1139_vm3, %v1110_v1 }
 0x195   :  { %v1030_v22 = vpop.f32.mrf.mxu2 }
 0x196   :  { %1944 = vmatmul.msk.f32.gmra.mxu3 %vm1139_vm3, %v1110_v1  ;;  %v1031_v14 = vadd.f32 %v1030_v22, %v941_v30 }
 0x197   :  { %v944_v9 = vpop.f32.mrf.mxu0 }
 0x198   :  { %v1090_v29 = vmax.f32 %v834_v38, %v1031_v14 }
 0x199   :  { %v845_v35 = vpop.f32.mrf.mxu3 }
 0x19a   :  { %991 = vmatmul.f32.gmra.mxu0 %v616_v63  ;;  %1924 = vmatmul.msk.f32.gmra.mxu2 %vm636_vm2, %v617_v57  ;;  %v840_v57 = vadd.f32 %v839_v16, %v750_v59  ;;  %v846_v15 = vadd.f32 %v845_v35, %v756_v17  ;;  %v1986_v16 = vld [vmem:[%s3564_s4 + $0x130] sm:$0xff] }
 0x19b   :  { %v759_v55 = vpop.f32.mrf.mxu1  ;;  %1399 = vmatpush.msrb.mxu1 %v1986_v16 }
 0x19d   :  { %v1033_v49 = vpop.f32.mrf.mxu2  ;;  %1400 = vmatpush.msrb.mxu1 %v1985_v54 }
 0x19e   :  { %v1034_v10 = vadd.f32 %v1033_v49, %v944_v9 }
 0x19f   :  { %v947_v18 = vpop.f32.mrf.mxu0  ;;  %1401 = vmatpush.msrb.mxu1 %v1984_v6  ;;  %v1467_v6 = vld [vmem:[%s3566_s6 + $0x60] sm:$0xff] }
 0x1a0   :  { %v1091_v46 = vmax.f32 %v837_v48, %v1034_v10 }
 0x1a1   :  { %v848_v60 = vpop.f32.mrf.mxu3 }
 0x1a2   :  { %v1111_v50 = vmax.f32 %v1090_v29, %v1091_v46  ;;  %1959 = vmatmul.msk.f32.vlgmr.msra.gmra.mxu0 %vm1139_vm3, %v1110_v1  ;;  %v849_v56 = vadd.f32 %v848_v60, %v759_v55 }
 0x1a3   :  { %v762_v25 = vpop.f32.mrf.mxu1 }
 0x1a4   :  { %1936 = vmatmul.msk.f32.gmra.mxu1 %vm1139_vm3, %v1111_v50  ;;  %1945 = vmatmul.msk.f32.gmra.mxu3 %vm1139_vm3, %v1111_v50 }
 0x1a5   :  { %1976 = vmatmul.msk.f32.vlgmr.msra.gmra.mxu2 %vm1139_vm3, %v1111_v50  ;;  %v1036_v58 = vpop.f32.mrf.mxu2 }
 0x1a6   :  { %v1037_v8 = vadd.f32 %v1036_v58, %v947_v18 }
 0x1a7   :  { %v950_v52 = vpop.f32.mrf.mxu0 }
 0x1a8   :  { %v1092_v62 = vmax.f32 %v840_v57, %v1037_v8 }
 0x1a9   :  { %v851_v33 = vpop.f32.mrf.mxu3 }
 0x1aa   :  { %1960 = vmatmul.msk.f32.gmra.mxu0 %vm1139_vm3, %v1111_v50  ;;  %v852_v23 = vadd.f32 %v851_v33, %v762_v25 }
 0x1ab   :  { %v765_v3 = vpop.f32.mrf.mxu1 }
 0x1ad   :  { %v1039_v21 = vpop.f32.mrf.mxu2 }
 0x1ae   :  { %v1040_v63 = vadd.f32 %v1039_v21, %v950_v52 }
 0x1af   :  { %v953_v61 = vpop.f32.mrf.mxu0 }
 0x1b0   :  { %v1093_v2 = vmax.f32 %v843_v32, %v1040_v63 }
 0x1b1   :  { %v854_v40 = vpop.f32.mrf.mxu3 }
 0x1b2   :  { %v3182_v39 = vmax.f32 %v1092_v62, %v1093_v2  ;;  %v855_v37 = vadd.f32 %v854_v40, %v765_v3 }
 0x1b3   :  { %v768_v31 = vpop.f32.mrf.mxu1 }
 0x1b4   :  { %1937 = vmatmul.msk.f32.gmra.mxu1 %vm1139_vm3, %v3182_v39  ;;  %1946 = vmatmul.msk.f32.gmra.mxu3 %vm1139_vm3, %v3182_v39 }
 0x1b5   :  { %1961 = vmatmul.msk.f32.gmra.mxu0 %vm1139_vm3, %v3182_v39  ;;  %1977 = vmatmul.msk.f32.gmra.mxu2 %vm1139_vm3, %v3182_v39  ;;  %v1042_v4 = vpop.f32.mrf.mxu2 }
 0x1b6   :  { %v1043_v12 = vadd.f32 %v1042_v4, %v953_v61 }
 0x1b7   :  { %v956_v11 = vpop.f32.mrf.mxu0 }
 0x1b8   :  { %v1094_v41 = vmax.f32 %v846_v15, %v1043_v12 }
 0x1b9   :  { %v857_v44 = vpop.f32.mrf.mxu3 }
 0x1ba   :  { %v858_v48 = vadd.f32 %v857_v44, %v768_v31 }
 0x1bb   :  { %v771_v42 = vpop.f32.mrf.mxu1 }
 0x1bd   :  { %v1045_v13 = vpop.f32.mrf.mxu2 }
 0x1be   :  { %v1046_v53 = vadd.f32 %v1045_v13, %v956_v11 }
 0x1bf   :  { %v959_v19 = vpop.f32.mrf.mxu0 }
 0x1c0   :  { %v1095_v51 = vmax.f32 %v849_v56, %v1046_v53 }
 0x1c1   :  { %v860_v5 = vpop.f32.mrf.mxu3 }
 0x1c2   :  { %v3198_v24 = vmax.f32 %v1094_v41, %v1095_v51  ;;  %v861_v17 = vadd.f32 %v860_v5, %v771_v42 }
 0x1c3   :  { %v774_v35 = vpop.f32.mrf.mxu1 }
 0x1c4   :  { %1938 = vmatmul.msk.f32.gmra.mxu1 %vm1139_vm3, %v3198_v24  ;;  %1947 = vmatmul.msk.f32.gmra.mxu3 %vm1139_vm3, %v3198_v24 }
 0x1c5   :  { %1962 = vmatmul.msk.f32.gmra.mxu0 %vm1139_vm3, %v3198_v24  ;;  %1978 = vmatmul.msk.f32.gmra.mxu2 %vm1139_vm3, %v3198_v24  ;;  %v1048_v27 = vpop.f32.mrf.mxu2 }
 0x1c6   :  { %v1049_v59 = vadd.f32 %v1048_v27, %v959_v19 }
 0x1c7   :  { %v962_v26 = vpop.f32.mrf.mxu0 }
 0x1c8   :  { %v1096_v0 = vmax.f32 %v852_v23, %v1049_v59 }
 0x1c9   :  { %v863_v14 = vpop.f32.mrf.mxu3 }
 0x1ca   :  { %v864_v21 = vadd.f32 %v863_v14, %v774_v35 }
 0x1cb   :  { %v777_v20 = vpop.f32.mrf.mxu1 }
 0x1cd   :  { %v1051_v36 = vpop.f32.mrf.mxu2 }
 0x1ce   :  { %v1052_v43 = vadd.f32 %v1051_v36, %v962_v26 }
 0x1cf   :  { %v965_v30 = vpop.f32.mrf.mxu0 }
 0x1d0   :  { %v1097_v1 = vmax.f32 %v855_v37, %v1052_v43 }
 0x1d1   :  { %v866_v58 = vpop.f32.mrf.mxu3 }
 0x1d2   :  { %v3214_v34 = vmax.f32 %v1096_v0, %v1097_v1  ;;  %v867_v57 = vadd.f32 %v866_v58, %v777_v20  ;;  %v1469_v1 = vld [vmem:[%s3566_s6 + $0x70] sm:$0xff]  ;;  %v2013_v20 = vld [vmem:[%s3566_s6 + $0xe0] sm:$0xff] }
 0x1d3   :  { %v780_v32 = vpop.f32.mrf.mxu1 }
 0x1d4   :  { %1939 = vmatmul.msk.f32.gmra.mxu1 %vm1139_vm3, %v3214_v34  ;;  %1948 = vmatmul.msk.f32.gmra.mxu3 %vm1139_vm3, %v3214_v34 }
 0x1d5   :  { %1963 = vmatmul.msk.f32.gmra.mxu0 %vm1139_vm3, %v3214_v34  ;;  %1979 = vmatmul.msk.f32.gmra.mxu2 %vm1139_vm3, %v3214_v34  ;;  %v1054_v22 = vpop.f32.mrf.mxu2 }
 0x1d6   :  { %v1055_v49 = vadd.f32 %v1054_v22, %v965_v30  ;;  %v1468_v22 = vld [vmem:[%s3566_s6 + $0x68] sm:$0xff] }
 0x1d7   :  { %v968_v9 = vpop.f32.mrf.mxu0 }
 0x1d8   :  { %v1098_v29 = vmax.f32 %v858_v48, %v1055_v49  ;;  %v2014_v49 = vld [vmem:[%s3566_s6 + $0xe8] sm:$0xff]  ;;  %v1466_v48 = vld [vmem:[%s3566_s6 + $0x58] sm:$0xff] }
 0x1d9   :  { %v869_v7 = vpop.f32.mrf.mxu3 }
 0x1da   :  { %v870_v3 = vadd.f32 %v869_v7, %v780_v32  ;;  %v1464_v7 = vld [vmem:[%s3566_s6 + $0x48] sm:$0xff]  ;;  %v1462_v32 = vld [vmem:[%s3566_s6 + $0x38] sm:$0xff] }
 0x1db   :  { %v783_v4 = vpop.f32.mrf.mxu1 }
 0x1dd   :  { %v1057_v38 = vpop.f32.mrf.mxu2 }
 0x1de   :  { %v1058_v10 = vadd.f32 %v1057_v38, %v968_v9  ;;  %v2015_v9 = vld [vmem:[%s3566_s6 + $0xf0] sm:$0xff] }
 0x1df   :  { %v971_v18 = vpop.f32.mrf.mxu0 }
 0x1e0   :  { %v1099_v46 = vmax.f32 %v861_v17, %v1058_v10 }
 0x1e1   :  { %v872_v45 = vpop.f32.mrf.mxu3 }
 0x1e2   :  { %v1115_v50 = vmax.f32 %v1098_v29, %v1099_v46  ;;  %v873_v12 = vadd.f32 %v872_v45, %v783_v4  ;;  %v2007_v45 = vld [vmem:[%s3566_s6 + $0xb0] sm:$0xff]  ;;  %v1459_v4 = vld [vmem:[%s3566_s6 + $0x20] sm:$0xff] }
 0x1e3   :  { %v786_v19 = vpop.f32.mrf.mxu1 }
 0x1e4   :  { %1940 = vmatmul.msk.f32.gmra.mxu1 %vm1139_vm3, %v1115_v50  ;;  %1949 = vmatmul.msk.f32.gmra.mxu3 %vm1139_vm3, %v1115_v50 }
 0x1e5   :  { %1964 = vmatmul.msk.f32.gmra.mxu0 %vm1139_vm3, %v1115_v50  ;;  %1980 = vmatmul.msk.f32.gmra.mxu2 %vm1139_vm3, %v1115_v50  ;;  %v1060_v60 = vpop.f32.mrf.mxu2 }
 0x1e6   :  { %v1061_v55 = vadd.f32 %v1060_v60, %v971_v18  ;;  %v1465_v60 = vld [vmem:[%s3566_s6 + $0x50] sm:$0xff] }
 0x1e7   :  { %v974_v52 = vpop.f32.mrf.mxu0 }
 0x1e8   :  { %v1100_v62 = vmax.f32 %v864_v21, %v1061_v55  ;;  %v1463_v21 = vld [vmem:[%s3566_s6 + $0x40] sm:$0xff] }
 0x1e9   :  { %v875_v53 = vpop.f32.mrf.mxu3 }
 0x1ea   :  { %v876_v16 = vadd.f32 %v875_v53, %v786_v19  ;;  %v2003_v53 = vld [vmem:[%s3566_s6 + $0x90] sm:$0xff]  ;;  %v2002_v19 = vld [vmem:[%s3566_s6 + $0x88] sm:$0xff] }
 0x1ed   :  { %v1063_v8 = vpop.f32.mrf.mxu2 }
 0x1ee   :  { %v1064_v63 = vadd.f32 %v1063_v8, %v974_v52  ;;  %v2012_v52 = vld [vmem:[%s3566_s6 + $0xd8] sm:$0xff]  ;;  %v2011_v8 = vld [vmem:[%s3566_s6 + $0xd0] sm:$0xff] }
 0x1ef   :  { %v977_v61 = vpop.f32.mrf.mxu0 }
 0x1f0   :  { %v1101_v2 = vmax.f32 %v867_v57, %v1064_v63  ;;  %v2010_v57 = vld [vmem:[%s3566_s6 + $0xc8] sm:$0xff] }
 0x1f1   :  { %v878_v44 = vpop.f32.mrf.mxu3 }
 0x1f2   :  { %v1116_v33 = vmax.f32 %v1100_v62, %v1101_v2  ;;  %v1461_v62 = vld [vmem:[%s3566_s6 + $0x30] sm:$0xff]  ;;  %v2008_v2 = vld [vmem:[%s3566_s6 + $0xb8] sm:$0xff] }
 0x1f4   :  { %1941 = vmatmul.msk.f32.gmra.mxu1 %vm1139_vm3, %v1116_v33  ;;  %1965 = vmatmul.msk.f32.gmra.mxu0 %vm1139_vm3, %v1116_v33 }
 0x1f5   :  { %1981 = vmatmul.msk.f32.gmra.mxu2 %vm1139_vm3, %v1116_v33  ;;  %v1066_v25 = vpop.f32.mrf.mxu2 }
 0x1f6   :  { %v1067_v47 = vadd.f32 %v1066_v25, %v977_v61  ;;  %v2009_v61 = vld [vmem:[%s3566_s6 + $0xc0] sm:$0xff]  ;;  %v1460_v25 = vld [vmem:[%s3566_s6 + $0x28] sm:$0xff] }
 0x1f7   :  { %v980_v11 = vpop.f32.mrf.mxu0 }
 0x1f8   :  { %v1102_v15 = vmax.f32 %v870_v3, %v1067_v47  ;;  %v1458_v47 = vld [vmem:[%s3566_s6 + $0x18] sm:$0xff]  ;;  %v2005_v3 = vld [vmem:[%s3566_s6 + $0xa0] sm:$0xff] }
 0x1f9   :  { %v881_v30 = vpop.f32.mrf.mxu3 }
 0x1fc   :  { %1993 = vmatmul.msk.f32.vlgmr.msrb.gmra.mxu1 %vm1139_vm3, %v3182_v39  ;;  %v789_v39 = vpop.f32.mrf.mxu1 }
 0x1fd   :  { %v1069_v40 = vpop.f32.mrf.mxu2  ;;  %v879_v59 = vadd.f32 %v878_v44, %v789_v39 }
 0x1fe   :  { %v1070_v13 = vadd.f32 %v1069_v40, %v980_v11  ;;  %v2006_v11 = vld [vmem:[%s3566_s6 + $0xa8] sm:$0xff] }
 0x1ff   :  { %v983_v51 = vpop.f32.mrf.mxu0 }
 0x200   :  { %v1103_v56 = vmax.f32 %v873_v12, %v1070_v13  ;;  %v1457_v12 = vld [vmem:[%s3566_s6 + $0x10] sm:$0xff]  ;;  %v2004_v13 = vld [vmem:[%s3566_s6 + $0x98] sm:$0xff] }
 0x201   :  { %v884_v14 = vpop.f32.mrf.mxu3 }
 0x202   :  { %v1117_v41 = vmax.f32 %v1102_v15, %v1103_v56  ;;  %v1456_v56 = vld [vmem:[%s3566_s6 + $0x8] sm:$0xff] }
 0x204   :  { %1966 = vmatmul.msk.f32.gmra.mxu0 %vm1139_vm3, %v1117_v41  ;;  %1982 = vmatmul.msk.f32.gmra.mxu2 %vm1139_vm3, %v1117_v41  ;;  %v792_v0 = vpop.f32.mrf.mxu1 }
 0x205   :  { %1994 = vmatmul.msk.f32.gmra.mxu1 %vm1139_vm3, %v3198_v24  ;;  %v1072_v28 = vpop.f32.mrf.mxu2  ;;  %v1470_v24 = vld [vmem:[%s3566_s6 + $0x78] sm:$0xff]  ;;  %v882_v29 = vadd.f32 %v881_v30, %v792_v0 }
 0x206   :  { %v1073_v27 = vadd.f32 %v1072_v28, %v983_v51  ;;  %1471 = vmatpush.msrb.mxu3 %v1470_v24  ;;  %v2001_v51 = vld [vmem:[%s3566_s6 + $0x80] sm:$0xff] }
 0x207   :  { %v986_v31 = vpop.f32.mrf.mxu0 }
 0x208   :  { %v1104_v23 = vmax.f32 %v876_v16, %v1073_v27  ;;  %1472 = vmatpush.msrb.mxu3 %v1469_v1 }
 0x209   :  { %v1225_v39 = vpop.f32.mrf.mxu3 }
 0x20a   :  { %1473 = vmatpush.msrb.mxu3 %v1468_v22 }
 0x20c   :  { %v795_v17 = vpop.f32.mrf.mxu1  ;;  %1474 = vmatpush.msrb.mxu3 %v1467_v6 }
 0x20d   :  { %1995 = vmatmul.msk.f32.gmra.mxu1 %vm1139_vm3, %v3214_v34  ;;  %v1075_v26 = vpop.f32.mrf.mxu2  ;;  %v2016_v34 = vld [vmem:[%s3566_s6 + $0xf8] sm:$0xff]  ;;  %v885_v10 = vadd.f32 %v884_v14, %v795_v17 }
 0x20e   :  { %v1076_v36 = vadd.f32 %v1075_v26, %v986_v31  ;;  %1529 = vmatpush.msrb.mxu0 %v2016_v34  ;;  %1475 = vmatpush.msrb.mxu3 %v1466_v48 }
 0x20f   :  { %v989_v42 = vpop.f32.mrf.mxu0 }
 0x210   :  { %v1105_v37 = vmax.f32 %v879_v59, %v1076_v36  ;;  %1530 = vmatpush.msrb.mxu0 %v2015_v9  ;;  %1476 = vmatpush.msrb.mxu3 %v1465_v60 }
 0x212   :  { %v1118_v43 = vmax.f32 %v1104_v23, %v1105_v37  ;;  %1531 = vmatpush.msrb.mxu0 %v2014_v49  ;;  %1477 = vmatpush.msrb.mxu3 %v1464_v7  ;;  %v3356_v23 = vld [vmem:[%s3565_s5] ss:$0 sm:$0xff] }
 0x214   :  { %1983 = vmatmul.msk.f32.gmra.mxu2 %vm1139_vm3, %v1118_v43  ;;  %1532 = vmatpush.msrb.mxu0 %v2013_v20  ;;  %v1181_v55 = vpop.f32.mrf.mxu1 }
 0x215   :  { %1996 = vmatmul.msk.f32.gmra.mxu1 %vm1139_vm3, %v1115_v50  ;;  %v1078_v5 = vpop.f32.mrf.mxu2  ;;  %1478 = vmatpush.msrb.mxu3 %v1463_v21  ;;  %v1226_v26 = vadd.f32 %v1225_v39, %v1181_v55 }
 0x216   :  { %v1079_v18 = vadd.f32 %v1078_v5, %v989_v42  ;;  %1533 = vmatpush.msrb.mxu0 %v2012_v52 }
 0x217   :  { %v992_v35 = vpop.f32.mrf.mxu0  ;;  %1479 = vmatpush.msrb.mxu3 %v1462_v32 }
 0x218   :  { %v1106_v50 = vmax.f32 %v882_v29, %v1079_v18  ;;  %1534 = vmatpush.msrb.mxu0 %v2011_v8 }
 0x219   :  { %1480 = vmatpush.msrb.mxu3 %v1461_v62 }
 0x21a   :  { %1535 = vmatpush.msrb.mxu0 %v2010_v57 }
 0x21b   :  { %1481 = vmatpush.msrb.mxu3 %v1460_v25 }
 0x21c   :  { %v1184_v63 = vpop.f32.mrf.mxu1  ;;  %1536 = vmatpush.msrb.mxu0 %v2009_v61 }
 0x21d   :  { %1997 = vmatmul.msk.f32.gmra.mxu1 %vm1139_vm3, %v1116_v33  ;;  %v1081_v54 = vpop.f32.mrf.mxu2  ;;  %1482 = vmatpush.msrb.mxu3 %v1459_v4  ;;  %v2023_v4 = vld [vmem:[%s3567_s7 + $0x70] sm:$0xff] }
 0x21e   :  { %v1082_v38 = vadd.f32 %v1081_v54, %v992_v35  ;;  %1537 = vmatpush.msrb.mxu0 %v2008_v2 }
 0x21f   :  { %1483 = vmatpush.msrb.mxu3 %v1458_v47  ;;  %v1279_v31 = vpop.f32.mrf.mxu0 }
 0x220   :  { %v1107_v46 = vmax.f32 %v885_v10, %v1082_v38  ;;  %1538 = vmatpush.msrb.mxu0 %v2007_v45  ;;  %v1303_v59 = vadd.f32 %v1279_v31, %v1226_v26  ;;  %v2024_v45 = vld [vmem:[%s3567_s7 + $0x78] sm:$0xff] }
 0x221   :  { %1484 = vmatpush.msrb.mxu3 %v1457_v12  ;;  %1611 = vmatpush.msrb.mxu2 %v2024_v45  ;;  %v2036_v45 = vld [vmem:[%s3567_s7 + $0xc0] sm:$0xff] }
 0x222   :  { %v1119_v58 = vmax.f32 %v1106_v50, %v1107_v46  ;;  %1539 = vmatpush.msrb.mxu0 %v2006_v11 }
 0x223   :  { %1485 = vmatpush.msrb.mxu3 %v1456_v56  ;;  %1612 = vmatpush.msrb.mxu2 %v2023_v4 }
 0x224   :  { %v1187_v33 = vpop.f32.mrf.mxu1  ;;  %1540 = vmatpush.msrb.mxu0 %v2005_v3 }
 0x225   :  { %1998 = vmatmul.msk.f32.gmra.mxu1 %vm1139_vm3, %v1117_v41  ;;  %v1455_v41 = vld [vmem:[%s3566_s6] sm:$0xff] }
 0x226   :  { %1541 = vmatpush.msrb.mxu0 %v2004_v13  ;;  %1486 = vmatpush.msrb.mxu3 %v1455_v41 }
 0x227   :  { %v1282_v5 = vpop.f32.mrf.mxu0 }
 0x228   :  { %1542 = vmatpush.msrb.mxu0 %v2003_v53  ;;  %v1341_v16 = vpop.f32.mrf.mxu2 }
 0x229   :  { %v1365_v36 = vadd.f32 %v1341_v16, %v1303_v59 }
 0x22a   :  { %1543 = vmatpush.msrb.mxu0 %v2002_v19 }
 0x22c   :  { %1544 = vmatpush.msrb.mxu0 %v2001_v51 }
 0x22d   :  { %1999 = vmatmul.msk.f32.gmra.mxu1 %vm1139_vm3, %v1118_v43  ;;  %v1228_v43 = vpop.f32.mrf.mxu3 }
 0x22e   :  { %v1229_v42 = vadd.f32 %v1228_v43, %v1184_v63 }
 0x230   :  { %v1304_v34 = vadd.f32 %v1282_v5, %v1229_v42 }
 0x231   :  { %v1190_v40 = vpop.f32.mrf.mxu1 }
 0x232   :  { %v1285_v14 = vpop.f32.mrf.mxu0 }
 0x235   :  { %2000 = vmatmul.msk.f32.gmra.mxu1 %vm1139_vm3, %v1119_v58  ;;  %v1231_v6 = vpop.f32.mrf.mxu3 }
 0x236   :  { %v1232_v35 = vadd.f32 %v1231_v6, %v1187_v33 }
 0x238   :  { %v1344_v0 = vpop.f32.mrf.mxu2  ;;  %v1305_v48 = vadd.f32 %v1285_v14, %v1232_v35 }
 0x239   :  { %v1366_v54 = vadd.f32 %v1344_v0, %v1304_v34 }
 0x23d   :  { %v1234_v46 = vpop.f32.mrf.mxu3 }
 0x23e   :  { %v1235_v58 = vadd.f32 %v1234_v46, %v1190_v40  ;;  %v2022_v40 = vld [vmem:[%s3567_s7 + $0x68] sm:$0xff]  ;;  %v1588_v46 = vld [vmem:[%s3567_s7 + $0x30] sm:$0xff] }
 0x23f   :  { %1613 = vmatpush.msrb.mxu2 %v2022_v40 }
 0x241   :  { %v1193_v15 = vpop.f32.mrf.mxu1 }
 0x242   :  { %v1288_v50 = vpop.f32.mrf.mxu0 }
 0x243   :  { %v1306_v52 = vadd.f32 %v1288_v50, %v1235_v58  ;;  %v1587_v50 = vld [vmem:[%s3567_s7 + $0x28] sm:$0xff]  ;;  %v1586_v58 = vld [vmem:[%s3567_s7 + $0x20] sm:$0xff] }
 0x245   :  { %v1237_v57 = vpop.f32.mrf.mxu3 }
 0x246   :  { %v1238_v63 = vadd.f32 %v1237_v57, %v1193_v15 }
 0x248   :  { %v1347_v38 = vpop.f32.mrf.mxu2 }
 0x249   :  { %v1367_v10 = vadd.f32 %v1347_v38, %v1305_v48  ;;  %v2020_v38 = vld [vmem:[%s3567_s7 + $0x58] sm:$0xff]  ;;  %v2019_v48 = vld [vmem:[%s3567_s7 + $0x50] sm:$0xff] }
 0x24d   :  { %v1240_v3 = vpop.f32.mrf.mxu3 }
 0x251   :  { %v3347_v28 = vpop.f32.mrf.mxu1 }
 0x252   :  { %v1291_v32 = vpop.f32.mrf.mxu0  ;;  %v1241_v13 = vadd.f32 %v1240_v3, %v3347_v28 }
 0x253   :  { %v1307_v2 = vadd.f32 %v1291_v32, %v1238_v63  ;;  %v2038_v63 = vld [vmem:[%s3567_s7 + $0xd0] sm:$0xff] }
 0x257   :  { %v1243_v31 = vpop.f32.mrf.mxu3 }
 0x258   :  { %v1350_v60 = vpop.f32.mrf.mxu2 }
 0x259   :  { %v1368_v7 = vadd.f32 %v1350_v60, %v1306_v52  ;;  %v1585_v60 = vld [vmem:[%s3567_s7 + $0x18] sm:$0xff]  ;;  %v1584_v52 = vld [vmem:[%s3567_s7 + $0x10] sm:$0xff] }
 0x261   :  { %v3349_v44 = vpop.f32.mrf.mxu1 }
 0x262   :  { %v1294_v12 = vpop.f32.mrf.mxu0  ;;  %v1244_v16 = vadd.f32 %v1243_v31, %v3349_v44  ;;  %v2031_v31 = vld [vmem:[%s3567_s7 + $0xa0] sm:$0xff] }
 0x263   :  { %v1308_v53 = vadd.f32 %v1294_v12, %v1241_v13  ;;  %v2034_v12 = vld [vmem:[%s3567_s7 + $0xb8] sm:$0xff]  ;;  %v2033_v13 = vld [vmem:[%s3567_s7 + $0xb0] sm:$0xff] }
 0x268   :  { %v1353_v62 = vpop.f32.mrf.mxu2 }
 0x269   :  { %v1369_v25 = vadd.f32 %v1353_v62, %v1307_v2  ;;  %v2037_v2 = vld [vmem:[%s3567_s7 + $0xc8] sm:$0xff] }
 0x271   :  { %v3351_v27 = vpop.f32.mrf.mxu1  ;;  %v1297_v26 = vpop.f32.mrf.mxu0 }
 0x278   :  { %v1356_v56 = vpop.f32.mrf.mxu2 }
 0x279   :  { %v1403_v37 = vpop.f32.mrf.mxu1  ;;  %v1370_v41 = vadd.f32 %v1356_v56, %v1308_v53  ;;  %v1731_v56 = vld [vmem:[%s3568_s9 + $0x68] sm:$0xff] }
 0x27a   :  { %v1427_v24 = vadd.f32 %v1403_v37, %v1365_v36  ;;  %v1309_v37 = vadd.f32 %v1297_v26, %v1244_v16  ;;  %v1729_v26 = vld [vmem:[%s3568_s9 + $0x58] sm:$0xff] }
 0x27c   :  { %v1439_v30 = vadd.f32 %v3356_v23, %v1427_v24 }
 0x27e   :  { %v1447_v1 = vmax.f32 %v1439_v30, 0.0  ;;  %v1246_v30 = vpop.f32.mrf.mxu3 }
 0x27f   :  { %v1247_v0 = vadd.f32 %v1246_v30, %v3351_v27  ;;  %v2043_v27 = vld [vmem:[%s3567_s7 + $0xf8] sm:$0xff] }
 0x280   :  { %1487 = vmatmul.f32.vlgmr.msrb.gmra.mxu3 %v1447_v1  ;;  %1545 = vmatmul.f32.vlgmr.msrb.gmra.mxu0 %v1447_v1 }
 0x281   :  { %v1300_v42 = vpop.f32.mrf.mxu0  ;;  %1699 = vmatpush.msra.mxu1 %v2043_v27  ;;  %v1724_v27 = vld [vmem:[%s3568_s9 + $0x30] sm:$0xff] }
 0x282   :  { %v1406_v22 = vpop.f32.mrf.mxu1 }
 0x283   :  { %v1428_v9 = vadd.f32 %v1406_v22, %v1366_v54  ;;  %v1310_v54 = vadd.f32 %v1300_v42, %v1247_v0 }
 0x285   :  { %v1440_v49 = vadd.f32 %v3356_v23, %v1428_v9 }
 0x287   :  { %v1448_v17 = vmax.f32 %v1440_v49, 0.0  ;;  %v1359_v36 = vpop.f32.mrf.mxu2  ;;  %v2021_v49 = vld [vmem:[%s3567_s7 + $0x60] sm:$0xff] }
 0x288   :  { %v1371_v43 = vadd.f32 %v1359_v36, %v1309_v37  ;;  %1614 = vmatpush.msrb.mxu2 %v2021_v49  ;;  %v1728_v36 = vld [vmem:[%s3568_s9 + $0x50] sm:$0xff] }
 0x289   :  { %1490 = vmatmul.f32.gmra.mxu3 %v1448_v17  ;;  %1548 = vmatmul.f32.gmra.mxu0 %v1448_v17  ;;  %v2018_v17 = vld [vmem:[%s3567_s7 + $0x48] sm:$0xff] }
 0x28a   :  { %v1409_v18 = vpop.f32.mrf.mxu1  ;;  %1615 = vmatpush.msrb.mxu2 %v2020_v38  ;;  %v1723_v38 = vld [vmem:[%s3568_s9 + $0x28] sm:$0xff] }
 0x28b   :  { %v1429_v29 = vadd.f32 %v1409_v18, %v1367_v10  ;;  %v2041_v10 = vld [vmem:[%s3567_s7 + $0xe8] sm:$0xff]  ;;  %v2017_v18 = vld [vmem:[%s3567_s7 + $0x40] sm:$0xff] }
 0x28c   :  { %1616 = vmatpush.msrb.mxu2 %v2019_v48  ;;  %v1721_v48 = vld [vmem:[%s3568_s9 + $0x18] sm:$0xff] }
 0x28d   :  { %v1441_v20 = vadd.f32 %v3356_v23, %v1429_v29  ;;  %v1589_v29 = vld [vmem:[%s3567_s7 + $0x38] sm:$0xff] }
 0x28e   :  { %1617 = vmatpush.msrb.mxu2 %v2018_v17  ;;  %v1720_v17 = vld [vmem:[%s3568_s9 + $0x10] sm:$0xff] }
 0x28f   :  { %v1449_v55 = vmax.f32 %v1441_v20, 0.0  ;;  %v2040_v20 = vld [vmem:[%s3567_s7 + $0xe0] sm:$0xff] }
 0x290   :  { %1618 = vmatpush.msrb.mxu2 %v2017_v18  ;;  %v1718_v18 = vld [vmem:[%s3568_s9] sm:$0xff] }
 0x291   :  { %1493 = vmatmul.f32.gmra.mxu3 %v1449_v55  ;;  %1551 = vmatmul.f32.gmra.mxu0 %v1449_v55 }
 0x292   :  { %v1412_v8 = vpop.f32.mrf.mxu1  ;;  %1634 = vmatpush.msra.mxu2 %v1589_v29  ;;  %v1772_v29 = vld [vmem:[%s3571_s11 + $0x50] sm:$0xf] }
 0x293   :  { %v1430_v21 = vadd.f32 %v1412_v8, %v1368_v7  ;;  %v1583_v7 = vld [vmem:[%s3567_s7 + $0x8] sm:$0xff]  ;;  %v1582_v8 = vld [vmem:[%s3567_s7] sm:$0xff] }
 0x294   :  { %1635 = vmatpush.msra.mxu2 %v1588_v46  ;;  %v1771_v46 = vld [vmem:[%s3571_s11 + $0x48] sm:$0xff] }
 0x295   :  { %v1442_v61 = vadd.f32 %v3356_v23, %v1430_v21  ;;  %v2039_v21 = vld [vmem:[%s3567_s7 + $0xd8] sm:$0xff] }
 0x296   :  { %1636 = vmatpush.msra.mxu2 %v1587_v50 }
 0x297   :  { %v1450_v33 = vmax.f32 %v1442_v61, 0.0  ;;  %v1362_v34 = vpop.f32.mrf.mxu2 }
 0x298   :  { %v1372_v44 = vadd.f32 %v1362_v34, %v1310_v54  ;;  %1637 = vmatpush.msra.mxu2 %v1586_v58  ;;  %v1725_v34 = vld [vmem:[%s3568_s9 + $0x38] sm:$0xff]  ;;  %v1770_v58 = vld [vmem:[%s3571_s11 + $0x40] sm:$0xff] }
 0x299   :  { %1496 = vmatmul.f32.gmra.mxu3 %v1450_v33  ;;  %1554 = vmatmul.f32.gmra.mxu0 %v1450_v33 }
 0x29a   :  { %v1415_v11 = vpop.f32.mrf.mxu1  ;;  %1638 = vmatpush.msra.mxu2 %v1585_v60  ;;  %v1768_v60 = vld [vmem:[%s3571_s11 + $0x30] sm:$0xff] }
 0x29b   :  { %v1431_v47 = vadd.f32 %v1415_v11, %v1369_v25 }
 0x29c   :  { %1639 = vmatpush.msra.mxu2 %v1584_v52  ;;  %v1767_v52 = vld [vmem:[%s3571_s11 + $0x28] sm:$0xff] }
 0x29d   :  { %v1443_v15 = vadd.f32 %v3356_v23, %v1431_v47 }
 0x29e   :  { %1640 = vmatpush.msra.mxu2 %v1583_v7 }
 0x29f   :  { %v1451_v19 = vmax.f32 %v1443_v15, 0.0  ;;  %v1732_v15 = vld [vmem:[%s3568_s9 + $0x70] sm:$0xff] }
 0x2a0   :  { %1641 = vmatpush.msra.mxu2 %v1582_v8  ;;  %1742 = vmatpush.msra.mxu3 %v1732_v15  ;;  %v1765_v8 = vld [vmem:[%s3571_s11 + $0x18] sm:$0xff] }
 0x2a1   :  { %1499 = vmatmul.f32.gmra.mxu3 %v1451_v19  ;;  %1557 = vmatmul.f32.gmra.mxu0 %v1451_v19  ;;  %v2032_v19 = vld [vmem:[%s3567_s7 + $0xa8] sm:$0xff] }
 0x2a2   :  { %v1418_v51 = vpop.f32.mrf.mxu1  ;;  %1743 = vmatpush.msra.mxu3 %v1731_v56 }
 0x2a3   :  { %v1432_v39 = vadd.f32 %v1418_v51, %v1370_v41  ;;  %v1730_v41 = vld [vmem:[%s3568_s9 + $0x60] sm:$0xff] }
 0x2a4   :  { %1744 = vmatpush.msra.mxu3 %v1730_v41 }
 0x2a5   :  { %v1444_v59 = vadd.f32 %v3356_v23, %v1432_v39 }
 0x2a6   :  { %1745 = vmatpush.msra.mxu3 %v1729_v26 }
 0x2a7   :  { %v1452_v28 = vmax.f32 %v1444_v59, 0.0  ;;  %v2030_v59 = vld [vmem:[%s3567_s7 + $0x98] sm:$0xff] }
 0x2a8   :  { %1746 = vmatpush.msra.mxu3 %v1728_v36 }
 0x2a9   :  { %1502 = vmatmul.f32.gmra.mxu3 %v1452_v28  ;;  %1560 = vmatmul.f32.gmra.mxu0 %v1452_v28  ;;  %v2029_v28 = vld [vmem:[%s3567_s7 + $0x90] sm:$0xff] }
 0x2aa   :  { %v1421_v24 = vpop.f32.mrf.mxu1 }
 0x2ab   :  { %v1433_v5 = vadd.f32 %v1421_v24, %v1371_v43  ;;  %v1727_v43 = vld [vmem:[%s3568_s9 + $0x48] sm:$0xff] }
 0x2ac   :  { %v2028_v24 = vld [vmem:[%s3567_s7 + $0x88] sm:$0xff]  ;;  %1747 = vmatpush.msra.mxu3 %v1727_v43 }
 0x2ad   :  { %v1445_v1 = vadd.f32 %v3356_v23, %v1433_v5  ;;  %v1726_v5 = vld [vmem:[%s3568_s9 + $0x40] sm:$0xff] }
 0x2ae   :  { %1748 = vmatpush.msra.mxu3 %v1726_v5 }
 0x2af   :  { %v1453_v22 = vmax.f32 %v1445_v1, 0.0  ;;  %v2027_v1 = vld [vmem:[%s3567_s7 + $0x80] sm:$0xff] }
 0x2b0   :  { %1749 = vmatpush.msra.mxu3 %v1725_v34 }
 0x2b1   :  { %1505 = vmatmul.f32.gmra.mxu3 %v1453_v22  ;;  %1563 = vmatmul.f32.gmra.mxu0 %v1453_v22 }
 0x2b2   :  { %v1424_v9 = vpop.f32.mrf.mxu1  ;;  %1750 = vmatpush.msra.mxu3 %v1724_v27 }
 0x2b3   :  { %v1434_v6 = vadd.f32 %v1424_v9, %v1372_v44 }
 0x2b4   :  { %1751 = vmatpush.msra.mxu3 %v1723_v38 }
 0x2b5   :  { %v1446_v14 = vadd.f32 %v3356_v23, %v1434_v6  ;;  %v2042_v23 = vld [vmem:[%s3567_s7 + $0xf0] sm:$0xff] }
 0x2b6   :  { %1700 = vmatpush.msra.mxu1 %v2042_v23  ;;  %v1722_v23 = vld [vmem:[%s3568_s9 + $0x20] sm:$0xff] }
 0x2b7   :  { %v1454_v35 = vmax.f32 %v1446_v14, 0.0  ;;  %1752 = vmatpush.msra.mxu3 %v1722_v23 }
 0x2b8   :  { %1701 = vmatpush.msra.mxu1 %v2041_v10  ;;  %v1719_v10 = vld [vmem:[%s3568_s9 + $0x8] sm:$0xff] }
 0x2b9   :  { %1508 = vmatmul.f32.gmra.mxu3 %v1454_v35  ;;  %1566 = vmatmul.f32.gmra.mxu0 %v1454_v35 }
 0x2ba   :  { %1702 = vmatpush.msra.mxu1 %v2040_v20  ;;  %1753 = vmatpush.msra.mxu3 %v1721_v48  ;;  %v1769_v20 = vld [vmem:[%s3571_s11 + $0x38] sm:$0xff] }
 0x2bc   :  { %1703 = vmatpush.msra.mxu1 %v2039_v21  ;;  %1754 = vmatpush.msra.mxu3 %v1720_v17 }
 0x2be   :  { %1704 = vmatpush.msra.mxu1 %v2038_v63  ;;  %1755 = vmatpush.msra.mxu3 %v1719_v10  ;;  %v2049_v63 = vld [vmem:[%s3569_s8] ss:$0 sm:$0xff] }
 0x2c0   :  { %1705 = vmatpush.msra.mxu1 %v2037_v2  ;;  %1756 = vmatpush.msra.mxu3 %v1718_v18 }
 0x2c2   :  { %1706 = vmatpush.msra.mxu1 %v2036_v45  ;;  %v1763_v45 = vld [vmem:[%s3571_s11 + $0x8] sm:$0xff] }
 0x2fd   :  { %v1546_v55 = vpop.f32.mrf.mxu0 }
 0x303   :  { %v1488_v57 = vpop.f32.mrf.mxu3 }
 0x304   :  { %v1570_v39 = vmax.f32 %v1488_v57, %v1546_v55  ;;  %v1766_v55 = vld [vmem:[%s3571_s11 + $0x20] sm:$0xff] }
 0x306   :  { %v1549_v32 = vpop.f32.mrf.mxu0 }
 0x30c   :  { %v1491_v61 = vpop.f32.mrf.mxu3 }
 0x30d   :  { %v1571_v53 = vmax.f32 %v1491_v61, %v1549_v32 }
 0x30e   :  { %v1552_v62 = vpop.f32.mrf.mxu0 }
 0x30f   :  { %v1578_v16 = vmax.f32 %v1570_v39, %v1571_v53 }
 0x314   :  { %v1494_v33 = vpop.f32.mrf.mxu3 }
 0x315   :  { %v1572_v11 = vmax.f32 %v1494_v33, %v1552_v62 }
 0x316   :  { %v1555_v25 = vpop.f32.mrf.mxu0 }
 0x31c   :  { %v1497_v4 = vpop.f32.mrf.mxu3 }
 0x31d   :  { %v1573_v47 = vmax.f32 %v1497_v4, %v1555_v25  ;;  %v1764_v25 = vld [vmem:[%s3571_s11 + $0x10] sm:$0xff]  ;;  %v1762_v4 = vld [vmem:[%s3571_s11] sm:$0xff] }
 0x31e   :  { %v1558_v40 = vpop.f32.mrf.mxu0 }
 0x31f   :  { %v1579_v3 = vmax.f32 %v1572_v11, %v1573_v47  ;;  %v2050_v11 = vld [vmem:[%s3570_s10] ss:$0 sm:$0xff] }
 0x321   :  { %2025 = vmatmul.msk.f32.vlgmr.msrb.gmra.mxu2 %vm1599_vm4, %v1579_v3 }
 0x322   :  { %1666 = vmatpush.msrb.mxu2 %v2034_v12  ;;  %v2051_v12 = vld [vmem:[%s3572_s12] ss:$0 sm:$0xff] }
 0x324   :  { %v1500_v51 = vpop.f32.mrf.mxu3  ;;  %1667 = vmatpush.msrb.mxu2 %v2033_v13 }
 0x325   :  { %v1574_v42 = vmax.f32 %v1500_v51, %v1558_v40 }
 0x326   :  { %1668 = vmatpush.msrb.mxu2 %v2032_v19  ;;  %v1561_v37 = vpop.f32.mrf.mxu0 }
 0x328   :  { %1669 = vmatpush.msrb.mxu2 %v2031_v31 }
 0x329   :  { %2026 = vmatmul.msk.f32.vlgmr.msra.gmra.mxu2 %vm1599_vm4, %v1578_v16 }
 0x32a   :  { %1670 = vmatpush.msrb.mxu2 %v2030_v59 }
 0x32c   :  { %v1503_v30 = vpop.f32.mrf.mxu3  ;;  %1671 = vmatpush.msrb.mxu2 %v2029_v28 }
 0x32d   :  { %v1575_v0 = vmax.f32 %v1503_v30, %v1561_v37 }
 0x32e   :  { %1672 = vmatpush.msrb.mxu2 %v2028_v24  ;;  %v1564_v22 = vpop.f32.mrf.mxu0 }
 0x32f   :  { %v1580_v54 = vmax.f32 %v1574_v42, %v1575_v0 }
 0x330   :  { %1673 = vmatpush.msrb.mxu2 %v2027_v1 }
 0x331   :  { %2035 = vmatmul.msk.f32.vlgmr.msrb.gmra.mxu2 %vm1599_vm4, %v1580_v54 }
 0x332   :  { %2046 = vmatpush.msk.msra.mxu2 %vm207_vm0, %v1772_v29 }
 0x334   :  { %v1506_v44 = vpop.f32.mrf.mxu3  ;;  %1790 = vmatpush.msra.mxu2 %v1771_v46 }
 0x335   :  { %v1576_v14 = vmax.f32 %v1506_v44, %v1564_v22 }
 0x336   :  { %v1567_v9 = vpop.f32.mrf.mxu0  ;;  %1791 = vmatpush.msra.mxu2 %v1770_v58 }
 0x338   :  { %1792 = vmatpush.msra.mxu2 %v1769_v20 }
 0x33a   :  { %1793 = vmatpush.msra.mxu2 %v1768_v60 }
 0x33c   :  { %v1509_v6 = vpop.f32.mrf.mxu3  ;;  %1794 = vmatpush.msra.mxu2 %v1767_v52 }
 0x33d   :  { %v1577_v35 = vmax.f32 %v1509_v6, %v1567_v9 }
 0x33e   :  { %1795 = vmatpush.msra.mxu2 %v1766_v55 }
 0x33f   :  { %v1581_v49 = vmax.f32 %v1576_v14, %v1577_v35 }
 0x340   :  { %1796 = vmatpush.msra.mxu2 %v1765_v8 }
 0x341   :  { %2044 = vmatmul.msk.f32.vlgmr.msra.gmra.mxu1 %vm1599_vm4, %v1581_v49 }
 0x342   :  { %1797 = vmatpush.msra.mxu2 %v1764_v25 }
 0x344   :  { %1798 = vmatpush.msra.mxu2 %v1763_v45 }
 0x346   :  { %1799 = vmatpush.msra.mxu2 %v1762_v4 }
 0x3a4   :  { %v1620_v50 = vpop.f32.mrf.mxu2 }
 0x3ac   :  { %v1643_v7 = vpop.f32.mrf.mxu2 }
 0x3ad   :  { %v1644_v57 = vadd.f32 %v1643_v7, %v1620_v50 }
 0x3b4   :  { %v1675_v21 = vpop.f32.mrf.mxu2 }
 0x3b5   :  { %v1678_v32 = vadd.f32 %v1675_v21, %v1644_v57 }
 0x3be   :  { %v1708_v61 = vpop.f32.mrf.mxu1 }
 0x3bf   :  { %v1711_v62 = vadd.f32 %v1708_v61, %v1678_v32 }
 0x3c1   :  { %v1716_v2 = vadd.f32 %v2049_v63, %v1711_v62 }
 0x3c3   :  { %v1717_v33 = vmax.f32 %v1716_v2, 0.0 }
 0x3c5   :  { %2045 = vmatmul.msk.f32.vlgmr.msra.gmra.mxu3 %vm1737_vm5, %v1717_v33 }
 0x448   :  { %v1758_v47 = vpop.f32.mrf.mxu3 }
 0x449   :  { %v1759_v40 = vadd.f32 %v2050_v11, %v1758_v47 }
 0x44b   :  { %v1761_v3 = vmax.f32 %v1759_v40, 0.0 }
 0x44d   :  { %2047 = vmatmul.msk.f32.vlgmr.msra.gmra.mxu2 %vm1777_vm6, %v1761_v3 }
 0x4d0   :  { %v1801_v13 = vpop.f32.mrf.mxu2 }
 0x4d1   :  { %v1802_v15 = vadd.f32 %v2051_v12, %v1801_v13 }
 0x4d3   :  { %1804 = vst [vmem:[%s3573_s13] sm:$0xff] %v1802_v15 }

</bundles_post_ra>
